<compile_context>
chip_gen: v7x
topology: tpu7x:2x2x1
jax: 0.10.0
libtpu: 0.0.40
codegen_flags: <defaults>
</compile_context>

<pallas_src>
import jax
import jax.numpy as jnp
from jax.experimental import pallas as pl
from jax.experimental.pallas import tpu as pltpu


# ---------------------------------------------------------------------------
# Pallas kernels
# ---------------------------------------------------------------------------
def _conv_mm_lrelu_kernel(col_ref, w_ref, b_ref, o_ref):
    """o = LeakyReLU(col @ w + b, 0.2);  bf16 MXU, f32 accumulate/epilogue."""
    acc = jnp.dot(col_ref[...], w_ref[...], preferred_element_type=jnp.float32)
    acc = acc + b_ref[...]                      # (1, N) broadcast over rows
    o_ref[...] = jnp.where(acc >= 0.0, acc, 0.2 * acc).astype(o_ref.dtype)


def _conv_mm_lrelu_fc_kernel(col_ref, w_ref, b_ref, wf_ref, o_ref):
    """conv2 tile + fused per-row fc partial:
       act = LeakyReLU(col @ w + b, 0.2)
       o[m, 0] = sum_c act[m, c] * wf[m, c]   (VPU mul + XLU lane reduce)."""
    acc = jnp.dot(col_ref[...], w_ref[...], preferred_element_type=jnp.float32)
    acc = acc + b_ref[...]
    act = jnp.where(acc >= 0.0, acc, 0.2 * acc)
    o_ref[...] = jnp.sum(act * wf_ref[...], axis=-1, keepdims=True)


# ---------------------------------------------------------------------------
# Wrappers around pallas_call (M-tiled, parallel grid)
# ---------------------------------------------------------------------------
_VMEM_LIMIT = 48 * 1024 * 1024   # headroom under v7x's 64 MiB physical VMEM


def _pick_tile_m(m, base, cap=1024):
    """Largest base*2^k that divides m and is <= min(cap, m)."""
    t = base
    while t * 2 <= min(cap, m) and m % (t * 2) == 0:
        t *= 2
    return t


def _conv1_layer(col, w, b):
    """col:(M,16) bf16, w:(16,64) bf16, b:(1,64) f32 -> (M,64) bf16."""
    M, K = col.shape
    N = w.shape[1]
    tile_m = _pick_tile_m(M, 256)        # M = B*256, multiple of 128
    return pl.pallas_call(
        _conv_mm_lrelu_kernel,
        out_shape=jax.ShapeDtypeStruct((M, N), jnp.bfloat16),
        grid=(M // tile_m,),
        in_specs=[
            pl.BlockSpec((tile_m, K), lambda i: (i, 0)),
            pl.BlockSpec((K, N), lambda i: (0, 0)),
            pl.BlockSpec((1, N), lambda i: (0, 0)),
        ],
        # N=64 (< 128 lanes) is the full array dim, so this is legal; the layer
        # is small, so the masked-store penalty is negligible next to conv2.
        out_specs=pl.BlockSpec((tile_m, N), lambda i: (i, 0)),
        compiler_params=pltpu.CompilerParams(
            dimension_semantics=("parallel",),
            vmem_limit_bytes=_VMEM_LIMIT,
        ),
    )(col, w, b)


def _conv2_fc_layer(col, w, b, wf_spatial):
    """col:(M,1024) bf16, w:(1024,128) bf16, b:(1,128) f32,
       wf_spatial:(64,128) f32 (fc weight per spatial position, NHWC order)
       -> per-row fc partials (M, 1) f32."""
    M, K = col.shape                     # M = B*64
    N = w.shape[1]                       # 128
    tile_m = _pick_tile_m(M, 64)         # multiple of 64: tiles align to batches
    wf_tiled = jnp.tile(wf_spatial, (tile_m // 64, 1)).astype(jnp.float32)
    return pl.pallas_call(
        _conv_mm_lrelu_fc_kernel,
        out_shape=jax.ShapeDtypeStruct((M, 1), jnp.float32),
        grid=(M // tile_m,),
        in_specs=[
            pl.BlockSpec((tile_m, K), lambda i: (i, 0)),
            pl.BlockSpec((K, N), lambda i: (0, 0)),
            pl.BlockSpec((1, N), lambda i: (0, 0)),
            pl.BlockSpec((tile_m, N), lambda i: (0, 0)),
        ],
        out_specs=pl.BlockSpec((tile_m, 1), lambda i: (i, 0)),
        compiler_params=pltpu.CompilerParams(
            dimension_semantics=("parallel",),
            vmem_limit_bytes=_VMEM_LIMIT,
        ),
    )(col, w, b, wf_tiled)


# ---------------------------------------------------------------------------
# Glue: NHWC im2col (pure layout plumbing; emitted in bf16)
# ---------------------------------------------------------------------------
def _im2col_nhwc(x_nhwc, k, stride, pad):
    B, H, W, C = x_nhwc.shape
    xp = jnp.pad(x_nhwc, ((0, 0), (pad, pad), (pad, pad), (0, 0)))
    OH = (H + 2 * pad - k) // stride + 1
    OW = (W + 2 * pad - k) // stride + 1
    cols = []
    for kh in range(k):
        for kw in range(k):
            cols.append(
                xp[:, kh:kh + stride * OH:stride, kw:kw + stride * OW:stride, :]
            )  # (B, OH, OW, C)
    col = jnp.stack(cols, axis=3)                  # (B, OH, OW, k*k, C)
    return col.reshape(B * OH * OW, k * k * C), OH, OW


# ---------------------------------------------------------------------------
# Parameters (deterministic synthetic; shapes from Discriminator.__init__)
# ---------------------------------------------------------------------------
def init_params(key):
    k1, k2, k3, k4, k5, k6 = jax.random.split(key, 6)
    return {
        "conv1_w": 0.05 * jax.random.normal(k1, (64, 1, 4, 4), jnp.float32),
        "conv1_b": 0.05 * jax.random.normal(k2, (64,), jnp.float32),
        "conv2_w": 0.05 * jax.random.normal(k3, (128, 64, 4, 4), jnp.float32),
        "conv2_b": 0.05 * jax.random.normal(k4, (128,), jnp.float32),
        "fc1_w": 0.01 * jax.random.normal(k5, (1, 128 * 8 * 8), jnp.float32),
        "fc1_b": 0.01 * jax.random.normal(k6, (1,), jnp.float32),
    }


# ---------------------------------------------------------------------------
# Forward pass (matches PyTorch semantics)
# ---------------------------------------------------------------------------
@jax.jit
def discriminator_forward(params, x):
    x = x.reshape(-1, 1, 32, 32)                              # x.view(-1,1,32,32)
    B = x.shape[0]
    # NHWC internal layout (C=1, so this transpose is a trivial reshape).
    x_nhwc = jnp.transpose(x, (0, 2, 3, 1)).astype(jnp.bfloat16)   # (B,32,32,1)

    # conv1: 1 -> 64, k=4, s=2, p=1  => (B,16,16,64) NHWC, LeakyReLU(0.2)
    col1, OH1, OW1 = _im2col_nhwc(x_nhwc, 4, 2, 1)            # (B*256, 16) bf16
    w1 = params["conv1_w"].transpose(2, 3, 1, 0).reshape(16, 64).astype(jnp.bfloat16)
    b1 = params["conv1_b"].reshape(1, 64).astype(jnp.float32)
    y1 = _conv1_layer(col1, w1, b1)                           # (B*256, 64) bf16
    y1 = y1.reshape(B, OH1, OW1, 64)                          # NHWC, no transpose

    # conv2: 64 -> 128, k=4, s=2, p=1 + LeakyReLU(0.2), with fc1 dot fused
    # into the kernel epilogue (per-row partial sums only).
    col2, _, _ = _im2col_nhwc(y1, 4, 2, 1)                    # (B*64, 1024) bf16
    w2 = params["conv2_w"].transpose(2, 3, 1, 0).reshape(1024, 128).astype(jnp.bfloat16)
    b2 = params["conv2_b"].reshape(1, 128).astype(jnp.float32)
    # fc weight re-indexed: PyTorch flattens (C=128, H=8, W=8); rows here are NHWC.
    wf_spatial = params["fc1_w"].reshape(128, 8, 8).transpose(1, 2, 0).reshape(64, 128)
    part = _conv2_fc_layer(col2, w2, b2, wf_spatial)          # (B*64, 1) f32

    logit = part.reshape(B, 64).sum(axis=1, keepdims=True) + params["fc1_b"]
    return jax.nn.sigmoid(logit)                              # (B, 1)


# ---------------------------------------------------------------------------
# Plain-JAX/XLA reference (f32) for a correctness sanity check
# ---------------------------------------------------------------------------
def reference_forward(params, x):
    x = x.reshape(-1, 1, 32, 32).astype(jnp.float32)
    y = jax.lax.conv_general_dilated(
        x, params["conv1_w"], (2, 2), ((1, 1), (1, 1)),
        dimension_numbers=("NCHW", "OIHW", "NCHW"))
    y = y + params["conv1_b"][None, :, None, None]
    y = jnp.where(y >= 0.0, y, 0.2 * y)
    y = jax.lax.conv_general_dilated(
        y, params["conv2_w"], (2, 2), ((1, 1), (1, 1)),
        dimension_numbers=("NCHW", "OIHW", "NCHW"))
    y = y + params["conv2_b"][None, :, None, None]
    y = jnp.where(y >= 0.0, y, 0.2 * y)
    flat = y.reshape(y.shape[0], -1)                          # (C,H,W) flatten order
    logit = flat @ params["fc1_w"].T + params["fc1_b"]
    return jax.nn.sigmoid(logit)


if __name__ == "__main__":
    key = jax.random.PRNGKey(0)
    pkey, xkey = jax.random.split(key)
    params = init_params(pkey)
    # Small batch; spatial is fixed at 32x32 by the module's view(-1,1,32,32).
    x = jax.random.normal(xkey, (2, 1, 32, 32), jnp.float32)

    out = discriminator_forward(params, x)
    out = jax.block_until_ready(out)
    assert out.shape == (2, 1)
    assert bool(jnp.all((out >= 0.0) & (out <= 1.0)))

    ref = jax.block_until_ready(reference_forward(params, x))
    max_err = float(jnp.max(jnp.abs(out - ref)))
    assert max_err < 2e-2, f"mismatch vs reference: {max_err}"

    print("KERNEL_OK")
</pallas_src>

<mosaic_0001>
module attributes {stable_mosaic.version = 11 : i64} {
  func.func @_conv_mm_lrelu_kernel(%arg0: i32, %arg1: memref<512x16xbf16, #tpu.memory_space<vmem>>, %arg2: memref<16x64xbf16, #tpu.memory_space<vmem>>, %arg3: memref<1x64xf32, #tpu.memory_space<vmem>>, %arg4: memref<512x64xbf16, #tpu.memory_space<vmem>>) attributes {dimension_semantics = [#tpu.dimension_semantics<parallel>], iteration_bounds = array<i64: 1>, scalar_prefetch = 0 : i64, scratch_operands = 0 : i64, tpu.core_type = #tpu.core_type<tc>, window_params = [{transform_indices = @transform_0, window_bounds = array<i64: 512, 16>}, {pipeline_mode = #tpu.pipeline_mode<synchronous>, transform_indices = @transform_1, window_bounds = array<i64: 16, 64>}, {pipeline_mode = #tpu.pipeline_mode<synchronous>, transform_indices = @transform_2, window_bounds = array<i64: 1, 64>}, {transform_indices = @transform_3, window_bounds = array<i64: 512, 64>}]} {
    %c0 = arith.constant 0 : index
    %c0_0 = arith.constant 0 : index
    %0 = vector.load %arg1[%c0, %c0_0] : memref<512x16xbf16, #tpu.memory_space<vmem>>, vector<512x16xbf16>
    %c0_1 = arith.constant 0 : index
    %c0_2 = arith.constant 0 : index
    %1 = vector.load %arg2[%c0_1, %c0_2] : memref<16x64xbf16, #tpu.memory_space<vmem>>, vector<16x64xbf16>
    %cst = arith.constant dense<0.000000e+00> : vector<512x64xf32>
    %2 = tpu.matmul %0, %1, %cst {dimension_numbers = #tpu.dot_dimension_numbers<[1], [0], [0], [1], [0, 0, 1, 1], [], []>} : vector<512x16xbf16>, vector<16x64xbf16>, vector<512x64xf32> -> vector<512x64xf32>
    %c0_3 = arith.constant 0 : index
    %c0_4 = arith.constant 0 : index
    %3 = vector.load %arg3[%c0_3, %c0_4] : memref<1x64xf32, #tpu.memory_space<vmem>>, vector<1x64xf32>
    %4 = vector.broadcast %3 : vector<1x64xf32> to vector<512x64xf32>
    %5 = arith.addf %2, %4 : vector<512x64xf32>
    %cst_5 = arith.constant 0.000000e+00 : f32
    %6 = vector.broadcast %cst_5 : f32 to vector<512x64xf32>
    %7 = arith.cmpf oge, %5, %6 : vector<512x64xf32>
    %cst_6 = arith.constant 2.000000e-01 : f32
    %8 = vector.broadcast %cst_6 : f32 to vector<512x64xf32>
    %9 = arith.mulf %8, %5 : vector<512x64xf32>
    %10 = arith.select %7, %5, %9 : vector<512x64xi1>, vector<512x64xf32>
    %11 = arith.truncf %10 : vector<512x64xf32> to vector<512x64xbf16>
    %c0_7 = arith.constant 0 : index
    %c0_8 = arith.constant 0 : index
    %12 = vector.load %arg4[%c0_7, %c0_8] : memref<512x64xbf16, #tpu.memory_space<vmem>>, vector<512x64xbf16>
    tpu.vector_store %arg4[%c0_7, %c0_8], %11 {strides = array<i32>} : memref<512x64xbf16, #tpu.memory_space<vmem>>, vector<512x64xbf16>,
    return
  }
  func.func @transform_0(%arg0: i32) -> (i32, i32) {
    %c0_i32 = arith.constant 0 : i32
    %c0_i32_0 = arith.constant 0 : i32
    return %arg0, %c0_i32 : i32, i32
  }
  func.func @transform_1(%arg0: i32) -> (i32, i32) {
    %c0_i32 = arith.constant 0 : i32
    %c0_i32_0 = arith.constant 0 : i32
    %c0_i32_1 = arith.constant 0 : i32
    return %c0_i32, %c0_i32_0 : i32, i32
  }
  func.func @transform_2(%arg0: i32) -> (i32, i32) {
    %c0_i32 = arith.constant 0 : i32
    %c0_i32_0 = arith.constant 0 : i32
    %c0_i32_1 = arith.constant 0 : i32
    return %c0_i32, %c0_i32_0 : i32, i32
  }
  func.func @transform_3(%arg0: i32) -> (i32, i32) {
    %c0_i32 = arith.constant 0 : i32
    %c0_i32_0 = arith.constant 0 : i32
    return %arg0, %c0_i32 : i32, i32
  }
}

module attributes {stable_mosaic.version = 11 : i64} {
  func.func @_conv_mm_lrelu_fc_kernel(%arg0: i32, %arg1: memref<128x1024xbf16, #tpu.memory_space<vmem>>, %arg2: memref<1024x128xbf16, #tpu.memory_space<vmem>>, %arg3: memref<1x128xf32, #tpu.memory_space<vmem>>, %arg4: memref<128x128xf32, #tpu.memory_space<vmem>>, %arg5: memref<128x1xf32, #tpu.memory_space<vmem>>) attributes {dimension_semantics = [#tpu.dimension_semantics<parallel>], iteration_bounds = array<i64: 1>, scalar_prefetch = 0 : i64, scratch_operands = 0 : i64, tpu.core_type = #tpu.core_type<tc>, window_params = [{transform_indices = @transform_0, window_bounds = array<i64: 128, 1024>}, {pipeline_mode = #tpu.pipeline_mode<synchronous>, transform_indices = @transform_1, window_bounds = array<i64: 1024, 128>}, {pipeline_mode = #tpu.pipeline_mode<synchronous>, transform_indices = @transform_2, window_bounds = array<i64: 1, 128>}, {pipeline_mode = #tpu.pipeline_mode<synchronous>, transform_indices = @transform_3, window_bounds = array<i64: 128, 128>}, {transform_indices = @transform_4, window_bounds = array<i64: 128, 1>}]} {
    %c0 = arith.constant 0 : index
    %c0_0 = arith.constant 0 : index
    %0 = vector.load %arg1[%c0, %c0_0] : memref<128x1024xbf16, #tpu.memory_space<vmem>>, vector<128x1024xbf16>
    %c0_1 = arith.constant 0 : index
    %c0_2 = arith.constant 0 : index
    %1 = vector.load %arg2[%c0_1, %c0_2] : memref<1024x128xbf16, #tpu.memory_space<vmem>>, vector<1024x128xbf16>
    %cst = arith.constant dense<0.000000e+00> : vector<128x128xf32>
    %2 = tpu.matmul %0, %1, %cst {dimension_numbers = #tpu.dot_dimension_numbers<[1], [0], [0], [1], [0, 0, 1, 1], [], []>} : vector<128x1024xbf16>, vector<1024x128xbf16>, vector<128x128xf32> -> vector<128x128xf32>
    %c0_3 = arith.constant 0 : index
    %c0_4 = arith.constant 0 : index
    %3 = vector.load %arg3[%c0_3, %c0_4] : memref<1x128xf32, #tpu.memory_space<vmem>>, vector<1x128xf32>
    %4 = vector.broadcast %3 : vector<1x128xf32> to vector<128x128xf32>
    %5 = arith.addf %2, %4 : vector<128x128xf32>
    %cst_5 = arith.constant 0.000000e+00 : f32
    %6 = vector.broadcast %cst_5 : f32 to vector<128x128xf32>
    %7 = arith.cmpf oge, %5, %6 : vector<128x128xf32>
    %cst_6 = arith.constant 2.000000e-01 : f32
    %8 = vector.broadcast %cst_6 : f32 to vector<128x128xf32>
    %9 = arith.mulf %8, %5 : vector<128x128xf32>
    %10 = arith.select %7, %5, %9 : vector<128x128xi1>, vector<128x128xf32>
    %c0_7 = arith.constant 0 : index
    %c0_8 = arith.constant 0 : index
    %11 = vector.load %arg4[%c0_7, %c0_8] : memref<128x128xf32, #tpu.memory_space<vmem>>, vector<128x128xf32>
    %12 = arith.mulf %10, %11 : vector<128x128xf32>
    %cst_9 = arith.constant dense<0.000000e+00> : vector<128xf32>
    %13 = vector.multi_reduction <add>, %12, %cst_9 [1] : vector<128x128xf32> to vector<128xf32>
    %14 = vector.shape_cast %13 : vector<128xf32> to vector<128x1xf32>
    %c0_10 = arith.constant 0 : index
    %c0_11 = arith.constant 0 : index
    %15 = vector.load %arg5[%c0_10, %c0_11] : memref<128x1xf32, #tpu.memory_space<vmem>>, vector<128x1xf32>
    tpu.vector_store %arg5[%c0_10, %c0_11], %14 {strides = array<i32>} : memref<128x1xf32, #tpu.memory_space<vmem>>, vector<128x1xf32>,
    return
  }
  func.func @transform_0(%arg0: i32) -> (i32, i32) {
    %c0_i32 = arith.constant 0 : i32
    %c0_i32_0 = arith.constant 0 : i32
    return %arg0, %c0_i32 : i32, i32
  }
  func.func @transform_1(%arg0: i32) -> (i32, i32) {
    %c0_i32 = arith.constant 0 : i32
    %c0_i32_0 = arith.constant 0 : i32
    %c0_i32_1 = arith.constant 0 : i32
    return %c0_i32, %c0_i32_0 : i32, i32
  }
  func.func @transform_2(%arg0: i32) -> (i32, i32) {
    %c0_i32 = arith.constant 0 : i32
    %c0_i32_0 = arith.constant 0 : i32
    %c0_i32_1 = arith.constant 0 : i32
    return %c0_i32, %c0_i32_0 : i32, i32
  }
  func.func @transform_3(%arg0: i32) -> (i32, i32) {
    %c0_i32 = arith.constant 0 : i32
    %c0_i32_0 = arith.constant 0 : i32
    %c0_i32_1 = arith.constant 0 : i32
    return %c0_i32, %c0_i32_0 : i32, i32
  }
  func.func @transform_4(%arg0: i32) -> (i32, i32) {
    %c0_i32 = arith.constant 0 : i32
    %c0_i32_0 = arith.constant 0 : i32
    return %arg0, %c0_i32 : i32, i32
  }
}

</mosaic_0001>

<bundles_post_ra>
// kernel: discriminator_forward.2
= control target key start
LH: loop header
LB: loop body
LE: loop exit
PB: predicated region body
PF: predicated region fallthrough
CT: control target
= control target key end

     0   :  { %vm254_vm0 = vcmask 130048   ;;  %vm1088_vm1 = vcmask 519168   ;;  %s2040_s1 = inlined_call_operand.vmem [shape: bf16[16,64], index: 1, kind: input, shape index: {}]   ;;  %s2041_s0 = inlined_call_operand.vmem [shape: bf16[512,16], index: 0, kind: input, shape index: {}]   ;;  %s2042_s2 = inlined_call_operand.vmem [shape: f32[1,64], index: 2, kind: input, shape index: {}]   ;;  %s2043_s3 = inlined_call_operand.vmem [shape: bf16[512,64], index: 3, kind: output, shape index: {}]  }
   0x1   :  { %v1452_v0 = vld [vmem:[%s2040_s1] sm:$0xff]   ;;  %v1455_v3 = vld [vmem:[%s2041_s0 + $0x8] sm:$0xff]   ;;  %v1457_v5 = vld [vmem:[%s2041_s0 + $0x10] sm:$0xff]  }
   0x2   :  { %v1453_v1 = vld [vmem:[%s2041_s0] sm:$0xff]   ;;  %1384 = vmatprep.subr.bf16.mxu0 %v1452_v0  ;;  %1450 = vmatprep.subr.bf16.mxu1 %v1452_v0  ;;  %v1456_v4 = vld [vmem:[%s2041_s0 + $0x88] sm:$0xff]   ;;  %v1458_v6 = vld [vmem:[%s2041_s0 + $0x90] sm:$0xff]  }
   0x3   :  { %v1454_v2 = vld [vmem:[%s2041_s0 + $0x80] sm:$0xff]   ;;  %1385 = vmatpush3.bf16.msra.mxu0 %v1452_v0  ;;  %1451 = vmatpush3.bf16.msra.mxu1 %v1452_v0  ;;  %v1459_v7 = vld [vmem:[%s2041_s0 + $0x18] sm:$0xff]   ;;  %v1463_v11 = vld [vmem:[%s2041_s0 + $0x28] sm:$0xff]  }
   0x4   :  { %1386 = vmatprep.mubr.msk.bf16.mxu0 %vm254_vm0, %v1453_v1  ;;  %1418 = vmatprep.mubr.msk.bf16.mxu1 %vm254_vm0, %v1454_v2  ;;  %v1460_v8 = vld [vmem:[%s2041_s0 + $0x98] sm:$0xff]   ;;  %v1461_v9 = vld [vmem:[%s2041_s0 + $0x20] sm:$0xff]   ;;  %v1464_v12 = vld [vmem:[%s2041_s0 + $0xa8] sm:$0xff]  }
   0x5   :  { %v1462_v10 = vld [vmem:[%s2041_s0 + $0xa0] sm:$0xff]   ;;  %v1465_v13 = vld [vmem:[%s2041_s0 + $0x30] sm:$0xff]   ;;  %v1467_v15 = vld [vmem:[%s2041_s0 + $0x38] sm:$0xff]  }
   0x6   :  { %1387 = vmatmul.mubr.msk.bf16.vlgmr.msra.gmra.mrb[0].mxu0 %vm254_vm0, %v1455_v3  ;;  %1419 = vmatmul.mubr.msk.bf16.vlgmr.msra.gmra.mrb[0].mxu1 %vm254_vm0, %v1456_v4  ;;  %v1466_v14 = vld [vmem:[%s2041_s0 + $0xb0] sm:$0xff]   ;;  %v1468_v16 = vld [vmem:[%s2041_s0 + $0xb8] sm:$0xff]   ;;  %v1469_v17 = vld [vmem:[%s2041_s0 + $0x40] sm:$0xff]  }
   0x7   :  { %1390 = vmatprep.mubr.msk.bf16.mxu0 %vm254_vm0, %v1457_v5  ;;  %1422 = vmatprep.mubr.msk.bf16.mxu1 %vm254_vm0, %v1458_v6  ;;  %v1470_v18 = vld [vmem:[%s2041_s0 + $0xc0] sm:$0xff]   ;;  %v1471_v19 = vld [vmem:[%s2041_s0 + $0x48] sm:$0xff]   ;;  %v1473_v21 = vld [vmem:[%s2041_s0 + $0x50] sm:$0xff]  }
   0x8   :  { %v1472_v20 = vld [vmem:[%s2041_s0 + $0xc8] sm:$0xff]   ;;  %v1474_v22 = vld [vmem:[%s2041_s0 + $0xd0] sm:$0xff]   ;;  %v1475_v23 = vld [vmem:[%s2041_s0 + $0x58] sm:$0xff]  }
   0x9   :  { %v1476_v24 = vld [vmem:[%s2041_s0 + $0xd8] sm:$0xff]   ;;  %v1477_v25 = vld [vmem:[%s2041_s0 + $0x60] sm:$0xff]   ;;  %v1479_v27 = vld [vmem:[%s2041_s0 + $0x68] sm:$0xff]  }
   0xa   :  { %v1478_v26 = vld [vmem:[%s2041_s0 + $0xe0] sm:$0xff]   ;;  %v1480_v28 = vld [vmem:[%s2041_s0 + $0xe8] sm:$0xff]   ;;  %v1481_v29 = vld [vmem:[%s2041_s0 + $0x70] sm:$0xff]  }
   0xb   :  { %v1482_v30 = vld [vmem:[%s2041_s0 + $0xf0] sm:$0xff]   ;;  %v1483_v31 = vld [vmem:[%s2041_s0 + $0x78] sm:$0xff]   ;;  %v1639_v33 = vld [vmem:[%s2042_s2] ss:$0 sm:$0xff] }
   0xc   :  { %v1484_v32 = vld [vmem:[%s2041_s0 + $0xf8] sm:$0xff]  }
   0xe   :  { %1391 = vmatmul.mubr.msk.bf16.gmra.mrb[4].mxu0 %vm254_vm0, %v1459_v7  ;;  %1423 = vmatmul.mubr.msk.bf16.gmra.mrb[4].mxu1 %vm254_vm0, %v1460_v8 }
   0xf   :  { %1394 = vmatprep.mubr.msk.bf16.mxu0 %vm254_vm0, %v1461_v9  ;;  %1426 = vmatprep.mubr.msk.bf16.mxu1 %vm254_vm0, %v1462_v10 }
  0x16   :  { %1395 = vmatmul.mubr.msk.bf16.gmra.mrb[8].mxu0 %vm254_vm0, %v1463_v11  ;;  %1427 = vmatmul.mubr.msk.bf16.gmra.mrb[8].mxu1 %vm254_vm0, %v1464_v12 }
  0x17   :  { %1398 = vmatprep.mubr.msk.bf16.mxu0 %vm254_vm0, %v1465_v13  ;;  %1430 = vmatprep.mubr.msk.bf16.mxu1 %vm254_vm0, %v1466_v14 }
  0x1e   :  { %1399 = vmatmul.mubr.msk.bf16.gmra.mrb[12].mxu0 %vm254_vm0, %v1467_v15  ;;  %1431 = vmatmul.mubr.msk.bf16.gmra.mrb[12].mxu1 %vm254_vm0, %v1468_v16 }
  0x1f   :  { %1402 = vmatprep.mubr.msk.bf16.mxu0 %vm254_vm0, %v1469_v17  ;;  %1434 = vmatprep.mubr.msk.bf16.mxu1 %vm254_vm0, %v1470_v18 }
  0x26   :  { %1403 = vmatmul.mubr.msk.bf16.gmra.mrb[16].mxu0 %vm254_vm0, %v1471_v19  ;;  %1435 = vmatmul.mubr.msk.bf16.gmra.mrb[16].mxu1 %vm254_vm0, %v1472_v20 }
  0x27   :  { %1406 = vmatprep.mubr.msk.bf16.mxu0 %vm254_vm0, %v1473_v21  ;;  %1438 = vmatprep.mubr.msk.bf16.mxu1 %vm254_vm0, %v1474_v22 }
  0x2e   :  { %1407 = vmatmul.mubr.msk.bf16.gmra.mrb[20].mxu0 %vm254_vm0, %v1475_v23  ;;  %1439 = vmatmul.mubr.msk.bf16.gmra.mrb[20].mxu1 %vm254_vm0, %v1476_v24 }
  0x2f   :  { %1410 = vmatprep.mubr.msk.bf16.mxu0 %vm254_vm0, %v1477_v25  ;;  %1442 = vmatprep.mubr.msk.bf16.mxu1 %vm254_vm0, %v1478_v26 }
  0x36   :  { %1411 = vmatmul.mubr.msk.bf16.gmra.mrb[24].mxu0 %vm254_vm0, %v1479_v27  ;;  %1443 = vmatmul.mubr.msk.bf16.gmra.mrb[24].mxu1 %vm254_vm0, %v1480_v28 }
  0x37   :  { %1414 = vmatprep.mubr.msk.bf16.mxu0 %vm254_vm0, %v1481_v29  ;;  %1446 = vmatprep.mubr.msk.bf16.mxu1 %vm254_vm0, %v1482_v30 }
  0x3e   :  { %1415 = vmatmul.mubr.msk.bf16.gmra.mrb[28].mxu0 %vm254_vm0, %v1483_v31  ;;  %1447 = vmatmul.mubr.msk.bf16.gmra.mrb[28].mxu1 %vm254_vm0, %v1484_v32 }
  0xd9   :  { %v1388_v34 = vpop.f32.mrb[0].mxu0  ;;  %v1420_v35 = vpop.f32.mrb[0].mxu1 }
  0xda   :  { %v394_v36 = vadd.f32 %v1388_v34, %v1639_v33  ;;  %v522_v37 = vadd.f32 %v1420_v35, %v1639_v33  ;;  %v385_v38 = vpop.f32.mrb[1].mxu0  ;;  %v513_v39 = vpop.f32.mrb[1].mxu1 }
  0xdb   :  { %v386_v40 = vadd.f32 %v1639_v33, %v385_v38  ;;  %v514_v41 = vadd.f32 %v1639_v33, %v513_v39  ;;  %v1389_v42 = vpop.f32.mrb[2].mxu0  ;;  %v1421_v43 = vpop.f32.mrb[2].mxu1 }
  0xdc   :  { %vm642_vm2 = vcmp.ge.f32.partialorder %v394_v36, 0.0  ;;  %v706_v44 = vmul.f32 0.2, %v394_v36  ;;  %vm674_vm3 = vcmp.ge.f32.partialorder %v522_v37, 0.0  ;;  %v738_v45 = vmul.f32 0.2, %v522_v37 }
  0xdd   :  { %vm640_vm4 = vcmp.ge.f32.partialorder %v386_v40, 0.0  ;;  %v704_v46 = vmul.f32 0.2, %v386_v40  ;;  %vm672_vm5 = vcmp.ge.f32.partialorder %v514_v41, 0.0  ;;  %v736_v47 = vmul.f32 0.2, %v514_v41 }
  0xde   :  { %v770_v48 = vsel %vm642_vm2, %v394_v36, %v706_v44  ;;  %v802_v49 = vsel %vm674_vm3, %v522_v37, %v738_v45  ;;  %v397_v50 = vadd.f32 %v1389_v42, %v1639_v33  ;;  %v525_v51 = vadd.f32 %v1421_v43, %v1639_v33  ;;  %v388_v52 = vpop.f32.mrb[3].mxu0  ;;  %v516_v53 = vpop.f32.mrb[3].mxu1 }
  0xdf   :  { %v1289_v54 = vpack.c.bf16 %v770_v48, %v770_v48  ;;  %v1321_v55 = vpack.c.bf16 %v802_v49, %v802_v49  ;;  %v768_v56 = vsel %vm640_vm4, %v386_v40, %v704_v46  ;;  %v800_v57 = vsel %vm672_vm5, %v514_v41, %v736_v47 }
  0xe0   :  { %v1287_v58 = vpack.c.bf16 %v768_v56, %v768_v56  ;;  %v1319_v59 = vpack.c.bf16 %v800_v57, %v800_v57  ;;  %vm643_vm6 = vcmp.ge.f32.partialorder %v397_v50, 0.0  ;;  %v707_v60 = vmul.f32 0.2, %v397_v50 }
  0xe1   :  { %1091 = vst.msk [vmem:[%s2043_s3 + $0x8] sm:$0xf] %vm1088_vm1, %v1289_v54  ;;  %1123 = vst.msk [vmem:[%s2043_s3 + $0x88] sm:$0xf] %vm1088_vm1, %v1321_v55  ;;  %vm675_vm7 = vcmp.ge.f32.partialorder %v525_v51, 0.0  ;;  %v389_v62 = vadd.f32 %v1639_v33, %v388_v52  ;;  %v517_v63 = vadd.f32 %v1639_v33, %v516_v53  ;;  %v1392_v0 = vpop.f32.mrb[4].mxu0 }
  0xe2   :  { %v739_v61 = vmul.f32 0.2, %v525_v51  ;;  %v1424_v1 = vpop.f32.mrb[4].mxu1  ;;  %1089 = vst.msk [vmem:[%s2043_s3] sm:$0xf] %vm1088_vm1, %v1287_v58  ;;  %v771_v2 = vsel %vm643_vm6, %v397_v50, %v707_v60  ;;  %v410_v3 = vadd.f32 %v1392_v0, %v1639_v33  ;;  %v401_v5 = vpop.f32.mrb[5].mxu0 }
  0xe3   :  { %1121 = vst.msk [vmem:[%s2043_s3 + $0x80] sm:$0xf] %vm1088_vm1, %v1319_v59  ;;  %v538_v4 = vadd.f32 %v1424_v1, %v1639_v33  ;;  %v529_v6 = vpop.f32.mrb[5].mxu1  ;;  %v1290_v7 = vpack.c.bf16 %v771_v2, %v771_v2  ;;  %vm641_vm8 = vcmp.ge.f32.partialorder %v389_v62, 0.0  ;;  %v705_v9 = vmul.f32 0.2, %v389_v62 }
  0xe4   :  { %v803_v8 = vsel %vm675_vm7, %v525_v51, %v739_v61  ;;  %v1393_v10 = vpop.f32.mrb[6].mxu0  ;;  %v1425_v11 = vpop.f32.mrb[6].mxu1  ;;  %vm673_vm9 = vcmp.ge.f32.partialorder %v517_v63, 0.0  ;;  %v737_v13 = vmul.f32 0.2, %v517_v63  ;;  %vm646_vm10 = vcmp.ge.f32.partialorder %v410_v3, 0.0 }
  0xe5   :  { %v1322_v12 = vpack.c.bf16 %v803_v8, %v803_v8  ;;  %v404_v14 = vpop.f32.mrb[7].mxu0  ;;  %v532_v15 = vpop.f32.mrb[7].mxu1  ;;  %1092 = vst.msk [vmem:[%s2043_s3 + $0xc] sm:$0xf] %vm1088_vm1, %v1290_v7  ;;  %v769_v16 = vsel %vm641_vm8, %v389_v62, %v705_v9  ;;  %v710_v17 = vmul.f32 0.2, %v410_v3  ;;  %v402_v21 = vadd.f32 %v1639_v33, %v401_v5 }
  0xe6   :  { %vm678_vm11 = vcmp.ge.f32.partialorder %v538_v4, 0.0  ;;  %v742_v18 = vmul.f32 0.2, %v538_v4  ;;  %v1288_v19 = vpack.c.bf16 %v769_v16, %v769_v16  ;;  %v801_v20 = vsel %vm673_vm9, %v517_v63, %v737_v13 }
  0xe7   :  { %1124 = vst.msk [vmem:[%s2043_s3 + $0x8c] sm:$0xf] %vm1088_vm1, %v1322_v12  ;;  %v530_v22 = vadd.f32 %v1639_v33, %v529_v6  ;;  %v1320_v23 = vpack.c.bf16 %v801_v20, %v801_v20  ;;  %v774_v24 = vsel %vm646_vm10, %v410_v3, %v710_v17  ;;  %v413_v26 = vadd.f32 %v1393_v10, %v1639_v33 }
  0xe8   :  { %v806_v25 = vsel %vm678_vm11, %v538_v4, %v742_v18  ;;  %1090 = vst.msk [vmem:[%s2043_s3 + $0x4] sm:$0xf] %vm1088_vm1, %v1288_v19  ;;  %v1293_v27 = vpack.c.bf16 %v774_v24, %v774_v24  ;;  %vm644_vm12 = vcmp.ge.f32.partialorder %v402_v21, 0.0  ;;  %v708_v29 = vmul.f32 0.2, %v402_v21 }
  0xe9   :  { %v1325_v28 = vpack.c.bf16 %v806_v25, %v806_v25  ;;  %1122 = vst.msk [vmem:[%s2043_s3 + $0x84] sm:$0xf] %vm1088_vm1, %v1320_v23  ;;  %vm676_vm13 = vcmp.ge.f32.partialorder %v530_v22, 0.0  ;;  %v740_v30 = vmul.f32 0.2, %v530_v22  ;;  %vm647_vm14 = vcmp.ge.f32.partialorder %v413_v26, 0.0 }
  0xea   :  { %v711_v31 = vmul.f32 0.2, %v413_v26  ;;  %1095 = vst.msk [vmem:[%s2043_s3 + $0x18] sm:$0xf] %vm1088_vm1, %v1293_v27  ;;  %v772_v32 = vsel %vm644_vm12, %v402_v21, %v708_v29  ;;  %v541_v34 = vadd.f32 %v1425_v11, %v1639_v33  ;;  %v405_v35 = vadd.f32 %v1639_v33, %v404_v14  ;;  %v1396_v37 = vpop.f32.mrb[8].mxu0  ;;  %v1428_v38 = vpop.f32.mrb[8].mxu1 }
  0xeb   :  { %1127 = vst.msk [vmem:[%s2043_s3 + $0x98] sm:$0xf] %vm1088_vm1, %v1325_v28  ;;  %v533_v36 = vadd.f32 %v1639_v33, %v532_v15  ;;  %v1291_v39 = vpack.c.bf16 %v772_v32, %v772_v32  ;;  %v804_v40 = vsel %vm676_vm13, %v530_v22, %v740_v30  ;;  %v426_v42 = vadd.f32 %v1396_v37, %v1639_v33  ;;  %v417_v43 = vpop.f32.mrb[9].mxu0  ;;  %v545_v44 = vpop.f32.mrb[9].mxu1 }
  0xec   :  { %v775_v41 = vsel %vm647_vm14, %v413_v26, %v711_v31  ;;  %v1323_v45 = vpack.c.bf16 %v804_v40, %v804_v40  ;;  %vm679_vm15 = vcmp.ge.f32.partialorder %v541_v34, 0.0  ;;  %v743_v47 = vmul.f32 0.2, %v541_v34  ;;  %v1397_v48 = vpop.f32.mrb[10].mxu0  ;;  %v1429_v49 = vpop.f32.mrb[10].mxu1 }
  0xed   :  { %v1294_v46 = vpack.c.bf16 %v775_v41, %v775_v41  ;;  %1093 = vst.msk [vmem:[%s2043_s3 + $0x10] sm:$0xf] %vm1088_vm1, %v1291_v39  ;;  %vm645_vm0 = vcmp.ge.f32.partialorder %v405_v35, 0.0  ;;  %v709_v50 = vmul.f32 0.2, %v405_v35  ;;  %vm677_vm2 = vcmp.ge.f32.partialorder %v533_v36, 0.0 }
  0xee   :  { %v741_v51 = vmul.f32 0.2, %v533_v36  ;;  %1125 = vst.msk [vmem:[%s2043_s3 + $0x90] sm:$0xf] %vm1088_vm1, %v1323_v45  ;;  %v807_v52 = vsel %vm679_vm15, %v541_v34, %v743_v47  ;;  %vm650_vm3 = vcmp.ge.f32.partialorder %v426_v42, 0.0  ;;  %v554_v54 = vadd.f32 %v1428_v38, %v1639_v33  ;;  %v420_v55 = vpop.f32.mrb[11].mxu0 }
  0xef   :  { %1096 = vst.msk [vmem:[%s2043_s3 + $0x1c] sm:$0xf] %vm1088_vm1, %v1294_v46  ;;  %v714_v53 = vmul.f32 0.2, %v426_v42  ;;  %v548_v56 = vpop.f32.mrb[11].mxu1  ;;  %v1326_v57 = vpack.c.bf16 %v807_v52, %v807_v52  ;;  %v773_v58 = vsel %vm645_vm0, %v405_v35, %v709_v50  ;;  %v418_v60 = vadd.f32 %v1639_v33, %v417_v43 }
  0xf0   :  { %v805_v59 = vsel %vm677_vm2, %v533_v36, %v741_v51  ;;  %v1292_v61 = vpack.c.bf16 %v773_v58, %v773_v58  ;;  %vm682_vm4 = vcmp.ge.f32.partialorder %v554_v54, 0.0  ;;  %v746_v1 = vmul.f32 0.2, %v554_v54 }
  0xf1   :  { %v1324_v62 = vpack.c.bf16 %v805_v59, %v805_v59  ;;  %v778_v63 = vsel %vm650_vm3, %v426_v42, %v714_v53  ;;  %1128 = vst.msk [vmem:[%s2043_s3 + $0x9c] sm:$0xf] %vm1088_vm1, %v1326_v57  ;;  %vm648_vm5 = vcmp.ge.f32.partialorder %v418_v60, 0.0  ;;  %v712_v2 = vmul.f32 0.2, %v418_v60  ;;  %v1400_v3 = vpop.f32.mrb[12].mxu0 }
  0xf2   :  { %v1297_v0 = vpack.c.bf16 %v778_v63, %v778_v63  ;;  %1094 = vst.msk [vmem:[%s2043_s3 + $0x14] sm:$0xf] %vm1088_vm1, %v1292_v61  ;;  %v546_v4 = vadd.f32 %v1639_v33, %v545_v44  ;;  %v429_v5 = vadd.f32 %v1397_v48, %v1639_v33  ;;  %v557_v6 = vadd.f32 %v1429_v49, %v1639_v33  ;;  %v1432_v8 = vpop.f32.mrb[12].mxu1  ;;  %v433_v9 = vpop.f32.mrb[13].mxu0 }
  0xf3   :  { %1126 = vst.msk [vmem:[%s2043_s3 + $0x94] sm:$0xf] %vm1088_vm1, %v1324_v62  ;;  %v421_v7 = vadd.f32 %v1639_v33, %v420_v55  ;;  %v810_v10 = vsel %vm682_vm4, %v554_v54, %v746_v1  ;;  %v776_v11 = vsel %vm648_vm5, %v418_v60, %v712_v2  ;;  %v549_v12 = vadd.f32 %v1639_v33, %v548_v56  ;;  %v561_v14 = vpop.f32.mrb[13].mxu1  ;;  %v1401_v15 = vpop.f32.mrb[14].mxu0 }
  0xf4   :  { %1099 = vst.msk [vmem:[%s2043_s3 + $0x28] sm:$0xf] %vm1088_vm1, %v1297_v0  ;;  %v442_v13 = vadd.f32 %v1400_v3, %v1639_v33  ;;  %v1329_v16 = vpack.c.bf16 %v810_v10, %v810_v10  ;;  %v1295_v17 = vpack.c.bf16 %v776_v11, %v776_v11  ;;  %vm680_vm6 = vcmp.ge.f32.partialorder %v546_v4, 0.0  ;;  %v1433_v19 = vpop.f32.mrb[14].mxu1  ;;  %v436_v20 = vpop.f32.mrb[15].mxu0 }
  0xf5   :  { %v744_v18 = vmul.f32 0.2, %v546_v4  ;;  %vm651_vm7 = vcmp.ge.f32.partialorder %v429_v5, 0.0  ;;  %v715_v21 = vmul.f32 0.2, %v429_v5  ;;  %vm683_vm8 = vcmp.ge.f32.partialorder %v557_v6, 0.0 }
  0xf6   :  { %v747_v22 = vmul.f32 0.2, %v557_v6  ;;  %1131 = vst.msk [vmem:[%s2043_s3 + $0xa8] sm:$0xf] %vm1088_vm1, %v1329_v16  ;;  %1097 = vst.msk [vmem:[%s2043_s3 + $0x20] sm:$0xf] %vm1088_vm1, %v1295_v17  ;;  %v570_v37 = vadd.f32 %v1432_v8, %v1639_v33  ;;  %v434_v41 = vadd.f32 %v1639_v33, %v433_v9  ;;  %v562_v42 = vadd.f32 %v1639_v33, %v561_v14 }
  0xf7   :  { %v808_v23 = vsel %vm680_vm6, %v546_v4, %v744_v18  ;;  %vm649_vm9 = vcmp.ge.f32.partialorder %v421_v7, 0.0  ;;  %v713_v24 = vmul.f32 0.2, %v421_v7  ;;  %vm681_vm10 = vcmp.ge.f32.partialorder %v549_v12, 0.0  ;;  %v564_v25 = vpop.f32.mrb[15].mxu1 }
  0xf8   :  { %v1327_v26 = vpack.c.bf16 %v808_v23, %v808_v23  ;;  %v779_v27 = vsel %vm651_vm7, %v429_v5, %v715_v21  ;;  %v811_v28 = vsel %vm683_vm8, %v557_v6, %v747_v22  ;;  %v745_v29 = vmul.f32 0.2, %v549_v12 }
  0xf9   :  { %v1298_v30 = vpack.c.bf16 %v779_v27, %v779_v27  ;;  %v1330_v31 = vpack.c.bf16 %v811_v28, %v811_v28  ;;  %v777_v32 = vsel %vm649_vm9, %v421_v7, %v713_v24  ;;  %vm654_vm11 = vcmp.ge.f32.partialorder %v442_v13, 0.0  ;;  %v1404_v38 = vpop.f32.mrb[16].mxu0  ;;  %v1436_v39 = vpop.f32.mrb[16].mxu1 }
  0xfa   :  { %1129 = vst.msk [vmem:[%s2043_s3 + $0xa0] sm:$0xf] %vm1088_vm1, %v1327_v26  ;;  %v1296_v34 = vpack.c.bf16 %v777_v32, %v777_v32  ;;  %v809_v35 = vsel %vm681_vm10, %v549_v12, %v745_v29  ;;  %v718_v36 = vmul.f32 0.2, %v442_v13  ;;  %v445_v43 = vadd.f32 %v1401_v15, %v1639_v33  ;;  %v449_v44 = vpop.f32.mrb[17].mxu0  ;;  %v577_v45 = vpop.f32.mrb[17].mxu1 }
  0xfb   :  { %1100 = vst.msk [vmem:[%s2043_s3 + $0x2c] sm:$0xf] %vm1088_vm1, %v1298_v30  ;;  %1132 = vst.msk [vmem:[%s2043_s3 + $0xac] sm:$0xf] %vm1088_vm1, %v1330_v31  ;;  %v1328_v40 = vpack.c.bf16 %v809_v35, %v809_v35  ;;  %vm686_vm12 = vcmp.ge.f32.partialorder %v570_v37, 0.0  ;;  %v573_v48 = vadd.f32 %v1433_v19, %v1639_v33  ;;  %v1765_v49 = vpop.f32.mrb[18].mxu0  ;;  %v437_v0 = vadd.f32 %v1639_v33, %v436_v20 }
  0xfc   :  { %1098 = vst.msk [vmem:[%s2043_s3 + $0x24] sm:$0xf] %vm1088_vm1, %v1296_v34  ;;  %v782_v46 = vsel %vm654_vm11, %v442_v13, %v718_v36  ;;  %v750_v47 = vmul.f32 0.2, %v570_v37  ;;  %v1767_v50 = vpop.f32.mrb[18].mxu1  ;;  %vm652_vm13 = vcmp.ge.f32.partialorder %v434_v41, 0.0  ;;  %v565_v4 = vadd.f32 %v1639_v33, %v564_v25 }
  0xfd   :  { %1130 = vst.msk [vmem:[%s2043_s3 + $0xa4] sm:$0xf] %vm1088_vm1, %v1328_v40  ;;  %v1301_v51 = vpack.c.bf16 %v782_v46, %v782_v46  ;;  %v716_v52 = vmul.f32 0.2, %v434_v41  ;;  %vm684_vm14 = vcmp.ge.f32.partialorder %v562_v42, 0.0  ;;  %v1773_v53 = vpop.f32.mrb[19].mxu0  ;;  %v458_v7 = vadd.f32 %v1404_v38, %v1639_v33 }
  0xfe   :  { %v1775_v54 = vpop.f32.mrb[19].mxu1  ;;  %v814_v55 = vsel %vm686_vm12, %v570_v37, %v750_v47  ;;  %v748_v56 = vmul.f32 0.2, %v562_v42  ;;  %vm655_vm15 = vcmp.ge.f32.partialorder %v445_v43, 0.0  ;;  %v719_v57 = vmul.f32 0.2, %v445_v43 }
  0xff   :  { %1103 = vst.msk [vmem:[%s2043_s3 + $0x38] sm:$0xf] %vm1088_vm1, %v1301_v51  ;;  %v1333_v58 = vpack.c.bf16 %v814_v55, %v814_v55  ;;  %v780_v59 = vsel %vm652_vm13, %v434_v41, %v716_v52  ;;  %vm687_vm0 = vcmp.ge.f32.partialorder %v573_v48, 0.0  ;;  %v751_v60 = vmul.f32 0.2, %v573_v48 }
 0x100   :  { %v1299_v61 = vpack.c.bf16 %v780_v59, %v780_v59  ;;  %v812_v62 = vsel %vm684_vm14, %v562_v42, %v748_v56  ;;  %v783_v63 = vsel %vm655_vm15, %v445_v43, %v719_v57  ;;  %vm653_vm2 = vcmp.ge.f32.partialorder %v437_v0, 0.0 }
 0x101   :  { %1135 = vst.msk [vmem:[%s2043_s3 + $0xb8] sm:$0xf] %vm1088_vm1, %v1333_v58  ;;  %v1331_v1 = vpack.c.bf16 %v812_v62, %v812_v62  ;;  %v1302_v2 = vpack.c.bf16 %v783_v63, %v783_v63  ;;  %v815_v3 = vsel %vm687_vm0, %v573_v48, %v751_v60  ;;  %v717_v6 = vmul.f32 0.2, %v437_v0  ;;  %v1408_v8 = vpop.f32.mrb[20].mxu0  ;;  %v1440_v9 = vpop.f32.mrb[20].mxu1 }
 0x102   :  { %1101 = vst.msk [vmem:[%s2043_s3 + $0x30] sm:$0xf] %vm1088_vm1, %v1299_v61  ;;  %v1334_v5 = vpack.c.bf16 %v815_v3, %v815_v3  ;;  %vm685_vm3 = vcmp.ge.f32.partialorder %v565_v4, 0.0  ;;  %v749_v10 = vmul.f32 0.2, %v565_v4  ;;  %v586_v11 = vadd.f32 %v1436_v39, %v1639_v33  ;;  %v465_v13 = vpop.f32.mrb[21].mxu0 }
 0x103   :  { %1133 = vst.msk [vmem:[%s2043_s3 + $0xb0] sm:$0xf] %vm1088_vm1, %v1331_v1  ;;  %1104 = vst.msk [vmem:[%s2043_s3 + $0x3c] sm:$0xf] %vm1088_vm1, %v1302_v2  ;;  %v450_v12 = vadd.f32 %v1639_v33, %v449_v44  ;;  %v1802_v14 = vpop.f32.mrb[21].mxu1  ;;  %v781_v15 = vsel %vm653_vm2, %v437_v0, %v717_v6  ;;  %vm658_vm4 = vcmp.ge.f32.partialorder %v458_v7, 0.0  ;;  %v578_v17 = vadd.f32 %v1639_v33, %v577_v45 }
 0x104   :  { %1136 = vst.msk [vmem:[%s2043_s3 + $0xbc] sm:$0xf] %vm1088_vm1, %v1334_v5  ;;  %v722_v16 = vmul.f32 0.2, %v458_v7  ;;  %v1809_v18 = vpop.f32.mrb[22].mxu0  ;;  %v1811_v19 = vpop.f32.mrb[22].mxu1  ;;  %v1300_v20 = vpack.c.bf16 %v781_v15, %v781_v15  ;;  %v813_v21 = vsel %vm685_vm3, %v565_v4, %v749_v10  ;;  %v461_v34 = vadd.f32 %v1765_v49, %v1639_v33 }
 0x105   :  { %vm690_vm5 = vcmp.ge.f32.partialorder %v586_v11, 0.0  ;;  %v754_v22 = vmul.f32 0.2, %v586_v11  ;;  %v1813_v23 = vpop.f32.mrb[23].mxu0  ;;  %v1815_v24 = vpop.f32.mrb[23].mxu1  ;;  %v1332_v25 = vpack.c.bf16 %v813_v21, %v813_v21  ;;  %vm656_vm6 = vcmp.ge.f32.partialorder %v450_v12, 0.0 }
 0x106   :  { %v786_v26 = vsel %vm658_vm4, %v458_v7, %v722_v16  ;;  %v720_v27 = vmul.f32 0.2, %v450_v12  ;;  %1102 = vst.msk [vmem:[%s2043_s3 + $0x34] sm:$0xf] %vm1088_vm1, %v1300_v20  ;;  %vm688_vm7 = vcmp.ge.f32.partialorder %v578_v17, 0.0  ;;  %v589_v35 = vadd.f32 %v1767_v50, %v1639_v33 }
 0x107   :  { %v1305_v28 = vpack.c.bf16 %v786_v26, %v786_v26  ;;  %v818_v29 = vsel %vm690_vm5, %v586_v11, %v754_v22  ;;  %v752_v30 = vmul.f32 0.2, %v578_v17  ;;  %1134 = vst.msk [vmem:[%s2043_s3 + $0xb4] sm:$0xf] %vm1088_vm1, %v1332_v25  ;;  %v453_v38 = vadd.f32 %v1639_v33, %v1773_v53 }
 0x108   :  { %v1337_v31 = vpack.c.bf16 %v818_v29, %v818_v29  ;;  %v784_v32 = vsel %vm656_vm6, %v450_v12, %v720_v27  ;;  %v581_v39 = vadd.f32 %v1639_v33, %v1775_v54  ;;  %vm659_vm8 = vcmp.ge.f32.partialorder %v461_v34, 0.0 }
 0x109   :  { %1107 = vst.msk [vmem:[%s2043_s3 + $0x48] sm:$0xf] %vm1088_vm1, %v1305_v28  ;;  %v1303_v36 = vpack.c.bf16 %v784_v32, %v784_v32  ;;  %v816_v37 = vsel %vm688_vm7, %v578_v17, %v752_v30  ;;  %v723_v41 = vmul.f32 0.2, %v461_v34  ;;  %vm691_vm9 = vcmp.ge.f32.partialorder %v589_v35, 0.0  ;;  %v1841_v42 = vpop.f32.mrb[24].mxu0 }
 0x10a   :  { %1139 = vst.msk [vmem:[%s2043_s3 + $0xc8] sm:$0xf] %vm1088_vm1, %v1337_v31  ;;  %v1335_v40 = vpack.c.bf16 %v816_v37, %v816_v37  ;;  %v1843_v43 = vpop.f32.mrb[24].mxu1  ;;  %v755_v44 = vmul.f32 0.2, %v589_v35  ;;  %vm657_vm10 = vcmp.ge.f32.partialorder %v453_v38, 0.0  ;;  %v474_v48 = vadd.f32 %v1408_v8, %v1639_v33 }
 0x10b   :  { %1105 = vst.msk [vmem:[%s2043_s3 + $0x40] sm:$0xf] %vm1088_vm1, %v1303_v36  ;;  %v721_v45 = vmul.f32 0.2, %v453_v38  ;;  %vm689_vm11 = vcmp.ge.f32.partialorder %v581_v39, 0.0  ;;  %v787_v46 = vsel %vm659_vm8, %v461_v34, %v723_v41  ;;  %v602_v49 = vadd.f32 %v1440_v9, %v1639_v33  ;;  %v1855_v50 = vpop.f32.mrb[25].mxu0 }
 0x10c   :  { %1137 = vst.msk [vmem:[%s2043_s3 + $0xc0] sm:$0xf] %vm1088_vm1, %v1335_v40  ;;  %v753_v47 = vmul.f32 0.2, %v581_v39  ;;  %v1857_v51 = vpop.f32.mrb[25].mxu1  ;;  %v1306_v52 = vpack.c.bf16 %v787_v46, %v787_v46  ;;  %v819_v53 = vsel %vm691_vm9, %v589_v35, %v755_v44  ;;  %v466_v55 = vadd.f32 %v1639_v33, %v465_v13  ;;  %v1861_v56 = vpop.f32.mrb[26].mxu0 }
 0x10d   :  { %v785_v54 = vsel %vm657_vm10, %v453_v38, %v721_v45  ;;  %v1863_v57 = vpop.f32.mrb[26].mxu1  ;;  %v1338_v58 = vpack.c.bf16 %v819_v53, %v819_v53  ;;  %vm662_vm12 = vcmp.ge.f32.partialorder %v474_v48, 0.0  ;;  %v1866_v61 = vpop.f32.mrb[27].mxu0  ;;  %v726_v0 = vmul.f32 0.2, %v474_v48 }
 0x10e   :  { %v1304_v59 = vpack.c.bf16 %v785_v54, %v785_v54  ;;  %v817_v60 = vsel %vm689_vm11, %v581_v39, %v753_v47  ;;  %v1868_v62 = vpop.f32.mrb[27].mxu1  ;;  %1108 = vst.msk [vmem:[%s2043_s3 + $0x4c] sm:$0xf] %vm1088_vm1, %v1306_v52  ;;  %vm694_vm13 = vcmp.ge.f32.partialorder %v602_v49, 0.0  ;;  %v758_v1 = vmul.f32 0.2, %v602_v49 }
 0x10f   :  { %v1336_v63 = vpack.c.bf16 %v817_v60, %v817_v60  ;;  %1140 = vst.msk [vmem:[%s2043_s3 + $0xcc] sm:$0xf] %vm1088_vm1, %v1338_v58  ;;  %vm660_vm14 = vcmp.ge.f32.partialorder %v466_v55, 0.0  ;;  %v724_v2 = vmul.f32 0.2, %v466_v55  ;;  %v594_v3 = vadd.f32 %v1639_v33, %v1802_v14 }
 0x110   :  { %1106 = vst.msk [vmem:[%s2043_s3 + $0x44] sm:$0xf] %vm1088_vm1, %v1304_v59  ;;  %v477_v4 = vadd.f32 %v1809_v18, %v1639_v33  ;;  %v790_v5 = vsel %vm662_vm12, %v474_v48, %v726_v0  ;;  %v822_v6 = vsel %vm694_vm13, %v602_v49, %v758_v1  ;;  %v605_v7 = vadd.f32 %v1811_v19, %v1639_v33 }
 0x111   :  { %1138 = vst.msk [vmem:[%s2043_s3 + $0xc4] sm:$0xf] %vm1088_vm1, %v1336_v63  ;;  %v469_v8 = vadd.f32 %v1639_v33, %v1813_v23  ;;  %v1309_v9 = vpack.c.bf16 %v790_v5, %v790_v5  ;;  %v1341_v10 = vpack.c.bf16 %v822_v6, %v822_v6  ;;  %v788_v11 = vsel %vm660_vm14, %v466_v55, %v724_v2  ;;  %v1894_v12 = vpop.f32.mrb[28].mxu0  ;;  %v1896_v13 = vpop.f32.mrb[28].mxu1 }
 0x112   :  { %vm692_vm15 = vcmp.ge.f32.partialorder %v594_v3, 0.0  ;;  %v1307_v14 = vpack.c.bf16 %v788_v11, %v788_v11  ;;  %v756_v15 = vmul.f32 0.2, %v594_v3  ;;  %vm663_vm0 = vcmp.ge.f32.partialorder %v477_v4, 0.0  ;;  %v1898_v17 = vpop.f32.mrb[29].mxu0  ;;  %v1916_v25 = vpop.f32.mrb[29].mxu1 }
 0x113   :  { %v727_v16 = vmul.f32 0.2, %v477_v4  ;;  %1111 = vst.msk [vmem:[%s2043_s3 + $0x58] sm:$0xf] %vm1088_vm1, %v1309_v9  ;;  %1143 = vst.msk [vmem:[%s2043_s3 + $0xd8] sm:$0xf] %vm1088_vm1, %v1341_v10  ;;  %v597_v22 = vadd.f32 %v1639_v33, %v1815_v24  ;;  %v490_v23 = vadd.f32 %v1841_v42, %v1639_v33  ;;  %v618_v38 = vadd.f32 %v1843_v43, %v1639_v33 }
 0x114   :  { %vm695_vm2 = vcmp.ge.f32.partialorder %v605_v7, 0.0  ;;  %v759_v18 = vmul.f32 0.2, %v605_v7  ;;  %vm661_vm3 = vcmp.ge.f32.partialorder %v469_v8, 0.0  ;;  %v725_v19 = vmul.f32 0.2, %v469_v8 }
 0x115   :  { %1109 = vst.msk [vmem:[%s2043_s3 + $0x50] sm:$0xf] %vm1088_vm1, %v1307_v14  ;;  %v820_v20 = vsel %vm692_vm15, %v594_v3, %v756_v15  ;;  %v791_v21 = vsel %vm663_vm0, %v477_v4, %v727_v16  ;;  %v1918_v26 = vpop.f32.mrb[30].mxu0  ;;  %v1920_v31 = vpop.f32.mrb[30].mxu1  ;;  %vm693_vm4 = vcmp.ge.f32.partialorder %v597_v22, 0.0  ;;  %vm666_vm5 = vcmp.ge.f32.partialorder %v490_v23, 0.0 }
 0x116   :  { %v1339_v27 = vpack.c.bf16 %v820_v20, %v820_v20  ;;  %v1310_v28 = vpack.c.bf16 %v791_v21, %v791_v21  ;;  %v823_v29 = vsel %vm695_vm2, %v605_v7, %v759_v18  ;;  %v789_v30 = vsel %vm661_vm3, %v469_v8, %v725_v19  ;;  %v1922_v32 = vpop.f32.mrb[31].mxu0  ;;  %v1924_v24 = vpop.f32.mrb[31].mxu1 }
 0x117   :  { %v1342_v34 = vpack.c.bf16 %v823_v29, %v823_v29  ;;  %v1308_v35 = vpack.c.bf16 %v789_v30, %v789_v30  ;;  %v757_v36 = vmul.f32 0.2, %v597_v22  ;;  %v730_v37 = vmul.f32 0.2, %v490_v23 }
 0x118   :  { %1141 = vst.msk [vmem:[%s2043_s3 + $0xd0] sm:$0xf] %vm1088_vm1, %v1339_v27  ;;  %1112 = vst.msk [vmem:[%s2043_s3 + $0x5c] sm:$0xf] %vm1088_vm1, %v1310_v28  ;;  %v482_v39 = vadd.f32 %v1639_v33, %v1855_v50  ;;  %v610_v41 = vadd.f32 %v1639_v33, %v1857_v51  ;;  %v493_v42 = vadd.f32 %v1861_v56, %v1639_v33  ;;  %vm698_vm6 = vcmp.ge.f32.partialorder %v618_v38, 0.0 }
 0x119   :  { %1144 = vst.msk [vmem:[%s2043_s3 + $0xdc] sm:$0xf] %vm1088_vm1, %v1342_v34  ;;  %1110 = vst.msk [vmem:[%s2043_s3 + $0x54] sm:$0xf] %vm1088_vm1, %v1308_v35  ;;  %v821_v40 = vsel %vm693_vm4, %v597_v22, %v757_v36  ;;  %v621_v43 = vadd.f32 %v1863_v57, %v1639_v33  ;;  %v794_v45 = vsel %vm666_vm5, %v490_v23, %v730_v37  ;;  %v762_v46 = vmul.f32 0.2, %v618_v38 }
 0x11a   :  { %v1340_v44 = vpack.c.bf16 %v821_v40, %v821_v40  ;;  %v1313_v47 = vpack.c.bf16 %v794_v45, %v794_v45  ;;  %vm664_vm7 = vcmp.ge.f32.partialorder %v482_v39, 0.0  ;;  %v728_v48 = vmul.f32 0.2, %v482_v39 }
 0x11b   :  { %vm696_vm8 = vcmp.ge.f32.partialorder %v610_v41, 0.0  ;;  %v826_v49 = vsel %vm698_vm6, %v618_v38, %v762_v46  ;;  %v760_v50 = vmul.f32 0.2, %v610_v41  ;;  %vm667_vm9 = vcmp.ge.f32.partialorder %v493_v42, 0.0 }
 0x11c   :  { %1142 = vst.msk [vmem:[%s2043_s3 + $0xd4] sm:$0xf] %vm1088_vm1, %v1340_v44  ;;  %v731_v51 = vmul.f32 0.2, %v493_v42  ;;  %1115 = vst.msk [vmem:[%s2043_s3 + $0x68] sm:$0xf] %vm1088_vm1, %v1313_v47  ;;  %v1345_v52 = vpack.c.bf16 %v826_v49, %v826_v49  ;;  %v792_v53 = vsel %vm664_vm7, %v482_v39, %v728_v48  ;;  %v485_v58 = vadd.f32 %v1639_v33, %v1866_v61 }
 0x11d   :  { %vm699_vm10 = vcmp.ge.f32.partialorder %v621_v43, 0.0  ;;  %v763_v54 = vmul.f32 0.2, %v621_v43  ;;  %v1311_v55 = vpack.c.bf16 %v792_v53, %v792_v53  ;;  %v824_v56 = vsel %vm696_vm8, %v610_v41, %v760_v50 }
 0x11e   :  { %v795_v57 = vsel %vm667_vm9, %v493_v42, %v731_v51  ;;  %1147 = vst.msk [vmem:[%s2043_s3 + $0xe8] sm:$0xf] %vm1088_vm1, %v1345_v52  ;;  %v1343_v59 = vpack.c.bf16 %v824_v56, %v824_v56  ;;  %v613_v0 = vadd.f32 %v1639_v33, %v1868_v62  ;;  %vm665_vm11 = vcmp.ge.f32.partialorder %v485_v58, 0.0 }
 0x11f   :  { %v1314_v60 = vpack.c.bf16 %v795_v57, %v795_v57  ;;  %v827_v63 = vsel %vm699_vm10, %v621_v43, %v763_v54  ;;  %1113 = vst.msk [vmem:[%s2043_s3 + $0x60] sm:$0xf] %vm1088_vm1, %v1311_v55  ;;  %v729_v2 = vmul.f32 0.2, %v485_v58  ;;  %v506_v61 = vadd.f32 %v1894_v12, %v1639_v33 }
 0x120   :  { %v1346_v1 = vpack.c.bf16 %v827_v63, %v827_v63  ;;  %1145 = vst.msk [vmem:[%s2043_s3 + $0xe0] sm:$0xf] %vm1088_vm1, %v1343_v59  ;;  %vm697_vm12 = vcmp.ge.f32.partialorder %v613_v0, 0.0  ;;  %v761_v62 = vmul.f32 0.2, %v613_v0  ;;  %v634_v3 = vadd.f32 %v1896_v13, %v1639_v33 }
 0x121   :  { %1116 = vst.msk [vmem:[%s2043_s3 + $0x6c] sm:$0xf] %vm1088_vm1, %v1314_v60  ;;  %v498_v4 = vadd.f32 %v1639_v33, %v1898_v17  ;;  %v793_v5 = vsel %vm665_vm11, %v485_v58, %v729_v2  ;;  %vm670_vm13 = vcmp.ge.f32.partialorder %v506_v61, 0.0  ;;  %v734_v6 = vmul.f32 0.2, %v506_v61 }
 0x122   :  { %1148 = vst.msk [vmem:[%s2043_s3 + $0xec] sm:$0xf] %vm1088_vm1, %v1346_v1  ;;  %v626_v7 = vadd.f32 %v1639_v33, %v1916_v25  ;;  %v1312_v8 = vpack.c.bf16 %v793_v5, %v793_v5  ;;  %v825_v9 = vsel %vm697_vm12, %v613_v0, %v761_v62  ;;  %vm702_vm14 = vcmp.ge.f32.partialorder %v634_v3, 0.0 }
 0x123   :  { %v766_v10 = vmul.f32 0.2, %v634_v3  ;;  %v1344_v11 = vpack.c.bf16 %v825_v9, %v825_v9  ;;  %v798_v12 = vsel %vm670_vm13, %v506_v61, %v734_v6  ;;  %vm668_vm15 = vcmp.ge.f32.partialorder %v498_v4, 0.0 }
 0x124   :  { %v732_v13 = vmul.f32 0.2, %v498_v4  ;;  %1114 = vst.msk [vmem:[%s2043_s3 + $0x64] sm:$0xf] %vm1088_vm1, %v1312_v8  ;;  %v1317_v14 = vpack.c.bf16 %v798_v12, %v798_v12  ;;  %vm700_vm0 = vcmp.ge.f32.partialorder %v626_v7, 0.0  ;;  %v509_v19 = vadd.f32 %v1918_v26, %v1639_v33 }
 0x125   :  { %v830_v15 = vsel %vm702_vm14, %v634_v3, %v766_v10  ;;  %v764_v16 = vmul.f32 0.2, %v626_v7  ;;  %1146 = vst.msk [vmem:[%s2043_s3 + $0xe4] sm:$0xf] %vm1088_vm1, %v1344_v11  ;;  %v637_v20 = vadd.f32 %v1920_v31, %v1639_v33  ;;  %v501_v23 = vadd.f32 %v1639_v33, %v1922_v32 }
 0x126   :  { %v1349_v17 = vpack.c.bf16 %v830_v15, %v830_v15  ;;  %v796_v18 = vsel %vm668_vm15, %v498_v4, %v732_v13  ;;  %1119 = vst.msk [vmem:[%s2043_s3 + $0x78] sm:$0xf] %vm1088_vm1, %v1317_v14  ;;  %v629_v25 = vadd.f32 %v1639_v33, %v1924_v24  ;;  %vm671_vm2 = vcmp.ge.f32.partialorder %v509_v19, 0.0 }
 0x127   :  { %v1315_v21 = vpack.c.bf16 %v796_v18, %v796_v18  ;;  %v828_v22 = vsel %vm700_vm0, %v626_v7, %v764_v16  ;;  %v735_v27 = vmul.f32 0.2, %v509_v19  ;;  %vm703_vm3 = vcmp.ge.f32.partialorder %v637_v20, 0.0 }
 0x128   :  { %1151 = vst.msk [vmem:[%s2043_s3 + $0xf8] sm:$0xf] %vm1088_vm1, %v1349_v17  ;;  %v1347_v26 = vpack.c.bf16 %v828_v22, %v828_v22  ;;  %v767_v28 = vmul.f32 0.2, %v637_v20  ;;  %vm669_vm4 = vcmp.ge.f32.partialorder %v501_v23, 0.0  ;;  %vm701_vm5 = vcmp.ge.f32.partialorder %v629_v25, 0.0 }
 0x129   :  { %1117 = vst.msk [vmem:[%s2043_s3 + $0x70] sm:$0xf] %vm1088_vm1, %v1315_v21  ;;  %v733_v29 = vmul.f32 0.2, %v501_v23  ;;  %v799_v33 = vsel %vm671_vm2, %v509_v19, %v735_v27  ;;  %v765_v30 = vmul.f32 0.2, %v629_v25 }
 0x12a   :  { %1149 = vst.msk [vmem:[%s2043_s3 + $0xf0] sm:$0xf] %vm1088_vm1, %v1347_v26  ;;  %v1318_v31 = vpack.c.bf16 %v799_v33, %v799_v33  ;;  %v831_v32 = vsel %vm703_vm3, %v637_v20, %v767_v28 }
 0x12b   :  { %v797_v34 = vsel %vm669_vm4, %v501_v23, %v733_v29  ;;  %v1350_v35 = vpack.c.bf16 %v831_v32, %v831_v32  ;;  %v829_v24 = vsel %vm701_vm5, %v629_v25, %v765_v30 }
 0x12c   :  { %v1316_v36 = vpack.c.bf16 %v797_v34, %v797_v34  ;;  %1120 = vst.msk [vmem:[%s2043_s3 + $0x7c] sm:$0xf] %vm1088_vm1, %v1318_v31  ;;  %v1348_v37 = vpack.c.bf16 %v829_v24, %v829_v24 }
 0x12d   :  { %1152 = vst.msk [vmem:[%s2043_s3 + $0xfc] sm:$0xf] %vm1088_vm1, %v1350_v35 }
 0x12e   :  { %1118 = vst.msk [vmem:[%s2043_s3 + $0x74] sm:$0xf] %vm1088_vm1, %v1316_v36  ;;  %1150 = vst.msk [vmem:[%s2043_s3 + $0xf4] sm:$0xf] %vm1088_vm1, %v1348_v37 }

// kernel: discriminator_forward.3
= control target key start
LH: loop header
LB: loop body
LE: loop exit
PB: predicated region body
PF: predicated region fallthrough
CT: control target
= control target key end

     0   :  { %s2481_s1 = inlined_call_operand.vmem [shape: bf16[1024,128], index: 1, kind: input, shape index: {}]   ;;  %s2482_s0 = inlined_call_operand.vmem [shape: bf16[128,1024], index: 0, kind: input, shape index: {}]   ;;  %s2483_s2 = inlined_call_operand.vmem [shape: f32[1,128], index: 2, kind: input, shape index: {}]   ;;  %s2484_s3 = inlined_call_operand.vmem [shape: f32[128,128], index: 3, kind: input, shape index: {}]   ;;  %s2485_s4 = inlined_call_operand.vmem [shape: f32[128,1], index: 4, kind: output, shape index: {}]  }
   0x1   :  { %v1827_v0 = vld [vmem:[%s2481_s1 + $0x40] sm:$0xff]   ;;  %v1831_v4 = vld [vmem:[%s2481_s1 + $0x48] sm:$0xff]   ;;  %v1835_v8 = vld [vmem:[%s2481_s1 + $0x50] sm:$0xff]  }
   0x2   :  { %v1828_v1 = vld [vmem:[%s2481_s1 + $0xc0] sm:$0xff]   ;;  %1571 = vmatprep.subr.bf16.mxu0 %v1827_v0  ;;  %v1832_v5 = vld [vmem:[%s2481_s1 + $0xc8] sm:$0xff]   ;;  %v1836_v9 = vld [vmem:[%s2481_s1 + $0xd0] sm:$0xff]  }
   0x3   :  { %v1829_v2 = vld [vmem:[%s2481_s1] sm:$0xff]   ;;  %1635 = vmatprep.subr.bf16.mxu1 %v1828_v1  ;;  %v1833_v6 = vld [vmem:[%s2481_s1 + $0x8] sm:$0xff]   ;;  %v1837_v10 = vld [vmem:[%s2481_s1 + $0x10] sm:$0xff]  }
   0x4   :  { %v1830_v3 = vld [vmem:[%s2481_s1 + $0x80] sm:$0xff]   ;;  %1572 = vmatpush3.bf16.msra.mxu0 %v1829_v2  ;;  %v1834_v7 = vld [vmem:[%s2481_s1 + $0x88] sm:$0xff]   ;;  %v1838_v11 = vld [vmem:[%s2481_s1 + $0x90] sm:$0xff]  }
   0x5   :  { %1636 = vmatpush3.bf16.msra.mxu1 %v1830_v3  ;;  %1573 = vmatprep.subr.bf16.mxu0 %v1831_v4  ;;  %v1839_v12 = vld [vmem:[%s2481_s1 + $0x58] sm:$0xff]   ;;  %v1843_v16 = vld [vmem:[%s2481_s1 + $0x60] sm:$0xff]   ;;  %v1847_v20 = vld [vmem:[%s2481_s1 + $0x68] sm:$0xff]  }
   0x6   :  { %1637 = vmatprep.subr.bf16.mxu1 %v1832_v5  ;;  %v1840_v13 = vld [vmem:[%s2481_s1 + $0xd8] sm:$0xff]   ;;  %v1844_v17 = vld [vmem:[%s2481_s1 + $0xe0] sm:$0xff]   ;;  %v1848_v21 = vld [vmem:[%s2481_s1 + $0xe8] sm:$0xff]  }
   0x7   :  { %v1841_v14 = vld [vmem:[%s2481_s1 + $0x18] sm:$0xff]   ;;  %v1845_v18 = vld [vmem:[%s2481_s1 + $0x20] sm:$0xff]   ;;  %v1849_v22 = vld [vmem:[%s2481_s1 + $0x28] sm:$0xff]  }
   0x8   :  { %1574 = vmatpush3.bf16.msra.mxu0 %v1833_v6  ;;  %v1842_v15 = vld [vmem:[%s2481_s1 + $0x98] sm:$0xff]   ;;  %v1846_v19 = vld [vmem:[%s2481_s1 + $0xa0] sm:$0xff]   ;;  %v1850_v23 = vld [vmem:[%s2481_s1 + $0xa8] sm:$0xff]  }
   0x9   :  { %1638 = vmatpush3.bf16.msra.mxu1 %v1834_v7  ;;  %1575 = vmatprep.subr.bf16.mxu0 %v1835_v8  ;;  %v1851_v24 = vld [vmem:[%s2481_s1 + $0x70] sm:$0xff]   ;;  %v1855_v28 = vld [vmem:[%s2481_s1 + $0x78] sm:$0xff]   ;;  %v18_v32 = vld [vmem:[%s2482_s0] sm:$0xff] }
   0xa   :  { %1639 = vmatprep.subr.bf16.mxu1 %v1836_v9  ;;  %v1852_v25 = vld [vmem:[%s2481_s1 + $0xf0] sm:$0xff]   ;;  %v1856_v29 = vld [vmem:[%s2481_s1 + $0xf8] sm:$0xff]   ;;  %v22_v33 = vld [vmem:[%s2482_s0 + $0x20] sm:$0xff] }
   0xb   :  { %v1853_v26 = vld [vmem:[%s2481_s1 + $0x30] sm:$0xff]   ;;  %v1857_v30 = vld [vmem:[%s2481_s1 + $0x38] sm:$0xff]   ;;  %v19_v34 = vld [vmem:[%s2482_s0 + $0x8] sm:$0xff]  ;;  %v1443_v35 = vcombine.low %v18_v32, %v22_v33  ;;  %v1444_v36 = vcombine.high %v18_v32, %v22_v33 }
   0xc   :  { %1576 = vmatpush3.bf16.msra.mxu0 %v1837_v10  ;;  %v1854_v27 = vld [vmem:[%s2481_s1 + $0xb0] sm:$0xff]   ;;  %v1858_v31 = vld [vmem:[%s2481_s1 + $0xb8] sm:$0xff]   ;;  %v23_v37 = vld [vmem:[%s2482_s0 + $0x28] sm:$0xff] }
   0xd   :  { %1640 = vmatpush3.bf16.msra.mxu1 %v1838_v11  ;;  %1577 = vmatprep.subr.bf16.mxu0 %v1839_v12  ;;  %v1445_v38 = vcombine.low %v19_v34, %v23_v37  ;;  %v1446_v39 = vcombine.high %v19_v34, %v23_v37  ;;  %v1859_v40 = vld [vmem:[%s2481_s1 + $0x140] sm:$0xff]   ;;  %v27_v47 = vld [vmem:[%s2482_s0 + $0x48] sm:$0xff]  ;;  %v1867_v62 = vld [vmem:[%s2481_s1 + $0x150] sm:$0xff]  }
   0xe   :  { %1641 = vmatprep.subr.bf16.mxu1 %v1840_v13  ;;  %953 = vmatprep.mubr.bf16.mxu0 %v1444_v36  ;;  %v1860_v41 = vld [vmem:[%s2481_s1 + $0x100] sm:$0xff]   ;;  %v31_v48 = vld [vmem:[%s2482_s0 + $0x68] sm:$0xff]  ;;  %v1868_v63 = vld [vmem:[%s2481_s1 + $0x110] sm:$0xff]  }
   0xf   :  { %1050 = vmatprep.mubr.bf16.mxu1 %v1446_v39  ;;  %v1861_v42 = vld [vmem:[%s2481_s1 + $0x1c0] sm:$0xff]   ;;  %v1454_v49 = vcombine.high %v27_v47, %v31_v48  ;;  %v1863_v50 = vld [vmem:[%s2481_s1 + $0x148] sm:$0xff]   ;;  %v1453_v53 = vcombine.low %v27_v47, %v31_v48  ;;  %v1869_v0 = vld [vmem:[%s2481_s1 + $0x1d0] sm:$0xff]  }
  0x10   :  { %1578 = vmatpush3.bf16.msra.mxu0 %v1841_v14  ;;  %v1862_v43 = vld [vmem:[%s2481_s1 + $0x180] sm:$0xff]   ;;  %v1864_v52 = vld [vmem:[%s2481_s1 + $0x108] sm:$0xff]   ;;  %v1870_v1 = vld [vmem:[%s2481_s1 + $0x190] sm:$0xff]  }
  0x11   :  { %1642 = vmatpush3.bf16.msra.mxu1 %v1842_v15  ;;  %1579 = vmatprep.subr.bf16.mxu0 %v1843_v16  ;;  %v26_v44 = vld [vmem:[%s2482_s0 + $0x40] sm:$0xff]  ;;  %v1865_v54 = vld [vmem:[%s2481_s1 + $0x1c8] sm:$0xff]   ;;  %v1871_v10 = vld [vmem:[%s2481_s1 + $0x158] sm:$0xff]  }
  0x12   :  { %1643 = vmatprep.subr.bf16.mxu1 %v1844_v17  ;;  %v30_v45 = vld [vmem:[%s2482_s0 + $0x60] sm:$0xff]  ;;  %v1866_v55 = vld [vmem:[%s2481_s1 + $0x188] sm:$0xff]   ;;  %v1872_v11 = vld [vmem:[%s2481_s1 + $0x118] sm:$0xff]  }
  0x13   :  { %v1452_v46 = vcombine.high %v26_v44, %v30_v45  ;;  %v1451_v51 = vcombine.low %v26_v44, %v30_v45  ;;  %v34_v56 = vld [vmem:[%s2482_s0 + $0x80] sm:$0xff]  ;;  %v35_v58 = vld [vmem:[%s2482_s0 + $0x88] sm:$0xff]  ;;  %v1873_v12 = vld [vmem:[%s2481_s1 + $0x1d8] sm:$0xff]  }
  0x14   :  { %1580 = vmatpush3.bf16.msra.mxu0 %v1845_v18  ;;  %v38_v57 = vld [vmem:[%s2482_s0 + $0xa0] sm:$0xff]  ;;  %v39_v59 = vld [vmem:[%s2482_s0 + $0xa8] sm:$0xff]  ;;  %v1874_v13 = vld [vmem:[%s2481_s1 + $0x198] sm:$0xff]  }
  0x15   :  { %1644 = vmatpush3.bf16.msra.mxu1 %v1846_v19  ;;  %1581 = vmatprep.subr.bf16.mxu0 %v1847_v20  ;;  %v1460_v60 = vcombine.high %v34_v56, %v38_v57  ;;  %v1462_v61 = vcombine.high %v35_v58, %v39_v59  ;;  %v1459_v2 = vcombine.low %v34_v56, %v38_v57  ;;  %v42_v3 = vld [vmem:[%s2482_s0 + $0xc0] sm:$0xff]  ;;  %v43_v5 = vld [vmem:[%s2482_s0 + $0xc8] sm:$0xff]  ;;  %v1884_v39 = vld [vmem:[%s2481_s1 + $0x130] sm:$0xff]  }
  0x16   :  { %1645 = vmatprep.subr.bf16.mxu1 %v1848_v21  ;;  %v46_v4 = vld [vmem:[%s2482_s0 + $0xe0] sm:$0xff]  ;;  %v1461_v6 = vcombine.low %v35_v58, %v39_v59  ;;  %v47_v8 = vld [vmem:[%s2482_s0 + $0xe8] sm:$0xff]  ;;  %v1888_v48 = vld [vmem:[%s2481_s1 + $0x138] sm:$0xff]  }
  0x17   :  { %v1468_v7 = vcombine.high %v42_v3, %v46_v4  ;;  %v1470_v9 = vcombine.high %v43_v5, %v47_v8  ;;  %v50_v14 = vld [vmem:[%s2482_s0 + $0x100] sm:$0xff]  ;;  %v51_v16 = vld [vmem:[%s2482_s0 + $0x108] sm:$0xff]  ;;  %v1467_v19 = vcombine.low %v42_v3, %v46_v4  ;;  %v1469_v21 = vcombine.low %v43_v5, %v47_v8  ;;  %v29_v8 = vld [vmem:[%s2482_s0 + $0x58] sm:$0xff] }
  0x18   :  { %1582 = vmatpush3.bf16.msra.mxu0 %v1849_v22  ;;  %v54_v15 = vld [vmem:[%s2482_s0 + $0x120] sm:$0xff]  ;;  %v55_v17 = vld [vmem:[%s2482_s0 + $0x128] sm:$0xff] }
  0x19   :  { %1646 = vmatpush3.bf16.msra.mxu1 %v1850_v23  ;;  %1583 = vmatprep.subr.bf16.mxu0 %v1851_v24  ;;  %v1875_v18 = vld [vmem:[%s2481_s1 + $0x160] sm:$0xff]   ;;  %v1476_v22 = vcombine.high %v50_v14, %v54_v15  ;;  %v1478_v24 = vcombine.high %v51_v16, %v55_v17  ;;  %v1881_v32 = vld [vmem:[%s2481_s1 + $0x1e8] sm:$0xff]   ;;  %v1475_v34 = vcombine.low %v50_v14, %v54_v15  ;;  %v36_v14 = vld [vmem:[%s2482_s0 + $0x90] sm:$0xff] }
  0x1a   :  { %1647 = vmatprep.subr.bf16.mxu1 %v1852_v25  ;;  %v1876_v20 = vld [vmem:[%s2481_s1 + $0x120] sm:$0xff]   ;;  %v1882_v33 = vld [vmem:[%s2481_s1 + $0x1a8] sm:$0xff]   ;;  %v40_v15 = vld [vmem:[%s2482_s0 + $0xb0] sm:$0xff] }
  0x1b   :  { %v1877_v23 = vld [vmem:[%s2481_s1 + $0x1e0] sm:$0xff]   ;;  %v67_v44 = vld [vmem:[%s2482_s0 + $0x188] sm:$0xff] }
  0x1c   :  { %1584 = vmatpush3.bf16.msra.mxu0 %v1853_v26  ;;  %v1878_v25 = vld [vmem:[%s2481_s1 + $0x1a0] sm:$0xff]   ;;  %v71_v45 = vld [vmem:[%s2482_s0 + $0x1a8] sm:$0xff] }
  0x1d   :  { %1648 = vmatpush3.bf16.msra.mxu1 %v1854_v27  ;;  %1585 = vmatprep.subr.bf16.mxu0 %v1855_v28  ;;  %v58_v26 = vld [vmem:[%s2482_s0 + $0x140] sm:$0xff]  ;;  %v1879_v28 = vld [vmem:[%s2481_s1 + $0x168] sm:$0xff]   ;;  %v1493_v59 = vcombine.low %v67_v44, %v71_v45 }
  0x1e   :  { %1649 = vmatprep.subr.bf16.mxu1 %v1856_v29  ;;  %v62_v27 = vld [vmem:[%s2482_s0 + $0x160] sm:$0xff]  ;;  %v59_v29 = vld [vmem:[%s2482_s0 + $0x148] sm:$0xff] }
  0x1f   :  { %v1484_v36 = vcombine.high %v58_v26, %v62_v27  ;;  %v1483_v47 = vcombine.low %v58_v26, %v62_v27  ;;  %v75_v56 = vld [vmem:[%s2482_s0 + $0x1c8] sm:$0xff]  ;;  %v1463_v26 = vcombine.low %v36_v14, %v40_v15 }
  0x20   :  { %1586 = vmatpush3.bf16.msra.mxu0 %v1857_v30  ;;  %v63_v30 = vld [vmem:[%s2482_s0 + $0x168] sm:$0xff] }
  0x21   :  { %1650 = vmatpush3.bf16.msra.mxu1 %v1858_v31  ;;  %1699 = vmatprep.subr.bf16.mxu0 %v1859_v40  ;;  %v1880_v31 = vld [vmem:[%s2481_s1 + $0x128] sm:$0xff]   ;;  %v1486_v37 = vcombine.high %v59_v29, %v63_v30  ;;  %v1885_v40 = vld [vmem:[%s2481_s1 + $0x1f0] sm:$0xff]  }
  0x22   :  { %1763 = vmatprep.subr.bf16.mxu1 %v1861_v42  ;;  %v70_v42 = vld [vmem:[%s2482_s0 + $0x1a0] sm:$0xff]  ;;  %v79_v57 = vld [vmem:[%s2482_s0 + $0x1e8] sm:$0xff] }
  0x23   :  { %954 = vmatmul.mubr.bf16.vlgmr.msra.gmra.mrb[0].mxu0 %v1443_v35  ;;  %v1477_v35 = vcombine.low %v51_v16, %v55_v17  ;;  %v1501_v3 = vcombine.low %v75_v56, %v79_v57  ;;  %v37_v16 = vld [vmem:[%s2482_s0 + $0x98] sm:$0xff] }
  0x24   :  { %1051 = vmatmul.mubr.bf16.vlgmr.msra.gmra.mrb[0].mxu1 %v1445_v38  ;;  %1700 = vmatpush3.bf16.msra.mxu0 %v1860_v41  ;;  %v1883_v38 = vld [vmem:[%s2481_s1 + $0x170] sm:$0xff]   ;;  %v66_v41 = vld [vmem:[%s2482_s0 + $0x180] sm:$0xff]  ;;  %v41_v17 = vld [vmem:[%s2482_s0 + $0xb8] sm:$0xff] }
  0x25   :  { %1764 = vmatpush3.bf16.msra.mxu1 %v1862_v43  ;;  %961 = vmatprep.mubr.bf16.mxu0 %v1452_v46  ;;  %v1886_v43 = vld [vmem:[%s2481_s1 + $0x1b0] sm:$0xff]   ;;  %v1887_v46 = vld [vmem:[%s2481_s1 + $0x178] sm:$0xff]   ;;  %v1491_v58 = vcombine.low %v66_v41, %v70_v42  ;;  %v1465_v27 = vcombine.low %v37_v16, %v41_v17 }
  0x26   :  { %1058 = vmatprep.mubr.bf16.mxu1 %v1454_v49  ;;  %1701 = vmatprep.subr.bf16.mxu0 %v1863_v50  ;;  %v1485_v49 = vcombine.low %v59_v29, %v63_v30  ;;  %v1492_v50 = vcombine.high %v66_v41, %v70_v42  ;;  %v52_v30 = vld [vmem:[%s2482_s0 + $0x110] sm:$0xff]  ;;  %v65_v41 = vld [vmem:[%s2482_s0 + $0x178] sm:$0xff] }
  0x27   :  { %1765 = vmatprep.subr.bf16.mxu1 %v1865_v54  ;;  %v74_v54 = vld [vmem:[%s2482_s0 + $0x1c0] sm:$0xff] }
  0x28   :  { %1702 = vmatpush3.bf16.msra.mxu0 %v1864_v52  ;;  %v1494_v52 = vcombine.high %v67_v44, %v71_v45 }
  0x29   :  { %1766 = vmatpush3.bf16.msra.mxu1 %v1866_v55  ;;  %1703 = vmatprep.subr.bf16.mxu0 %v1867_v62  ;;  %v78_v55 = vld [vmem:[%s2482_s0 + $0x1e0] sm:$0xff]  ;;  %v20_v62 = vld [vmem:[%s2482_s0 + $0x10] sm:$0xff] }
  0x2a   :  { %1767 = vmatprep.subr.bf16.mxu1 %v1869_v0  ;;  %v21_v0 = vld [vmem:[%s2482_s0 + $0x18] sm:$0xff] }
  0x2b   :  { %962 = vmatmul.mubr.bf16.gmra.mrb[4].mxu0 %v1451_v51  ;;  %v1889_v51 = vld [vmem:[%s2481_s1 + $0x1f8] sm:$0xff]  }
  0x2c   :  { %1059 = vmatmul.mubr.bf16.gmra.mrb[4].mxu1 %v1453_v53  ;;  %969 = vmatprep.mubr.bf16.mxu0 %v1460_v60  ;;  %v1890_v53 = vld [vmem:[%s2481_s1 + $0x1b8] sm:$0xff]   ;;  %v1500_v60 = vcombine.high %v74_v54, %v78_v55 }
  0x2d   :  { %1066 = vmatprep.mubr.bf16.mxu1 %v1462_v61  ;;  %1704 = vmatpush3.bf16.msra.mxu0 %v1868_v63  ;;  %v1502_v61 = vcombine.high %v75_v56, %v79_v57  ;;  %v24_v63 = vld [vmem:[%s2482_s0 + $0x30] sm:$0xff]  ;;  %v77_v56 = vld [vmem:[%s2482_s0 + $0x1d8] sm:$0xff] }
  0x2e   :  { %1768 = vmatpush3.bf16.msra.mxu1 %v1870_v1  ;;  %1705 = vmatprep.subr.bf16.mxu0 %v1871_v10  ;;  %v25_v1 = vld [vmem:[%s2482_s0 + $0x38] sm:$0xff]  ;;  %v1448_v4 = vcombine.high %v20_v62, %v24_v63  ;;  %v1447_v10 = vcombine.low %v20_v62, %v24_v63 }
  0x2f   :  { %1769 = vmatprep.subr.bf16.mxu1 %v1873_v12  ;;  %v1450_v5 = vcombine.high %v21_v0, %v25_v1  ;;  %v81_v57 = vld [vmem:[%s2482_s0 + $0x1f8] sm:$0xff] }
  0x30   :  { %v1505_v63 = vcombine.low %v77_v56, %v81_v57 }
  0x31   :  { %1706 = vmatpush3.bf16.msra.mxu0 %v1872_v11  ;;  %v1449_v11 = vcombine.low %v21_v0, %v25_v1 }
  0x32   :  { %1770 = vmatpush3.bf16.msra.mxu1 %v1874_v13  ;;  %1707 = vmatprep.subr.bf16.mxu0 %v1875_v18 }
  0x33   :  { %970 = vmatmul.mubr.bf16.gmra.mrb[8].mxu0 %v1459_v2  ;;  %1771 = vmatprep.subr.bf16.mxu1 %v1877_v23  ;;  %v1499_v2 = vcombine.low %v74_v54, %v78_v55  ;;  %v48_v23 = vld [vmem:[%s2482_s0 + $0xf0] sm:$0xff] }
  0x34   :  { %1067 = vmatmul.mubr.bf16.gmra.mrb[8].mxu1 %v1461_v6  ;;  %977 = vmatprep.mubr.bf16.mxu0 %v1468_v7  ;;  %v28_v6 = vld [vmem:[%s2482_s0 + $0x50] sm:$0xff] }
  0x35   :  { %1074 = vmatprep.mubr.bf16.mxu1 %v1470_v9  ;;  %1708 = vmatpush3.bf16.msra.mxu0 %v1876_v20  ;;  %v32_v7 = vld [vmem:[%s2482_s0 + $0x70] sm:$0xff]  ;;  %v33_v9 = vld [vmem:[%s2482_s0 + $0x78] sm:$0xff]  ;;  %v1464_v20 = vcombine.high %v36_v14, %v40_v15 }
  0x36   :  { %1772 = vmatpush3.bf16.msra.mxu1 %v1878_v25  ;;  %1709 = vmatprep.subr.bf16.mxu0 %v1879_v28  ;;  %v1456_v12 = vcombine.high %v28_v6, %v32_v7  ;;  %v1458_v13 = vcombine.high %v29_v8, %v33_v9  ;;  %v1455_v18 = vcombine.low %v28_v6, %v32_v7  ;;  %v49_v25 = vld [vmem:[%s2482_s0 + $0xf8] sm:$0xff]  ;;  %v76_v54 = vld [vmem:[%s2482_s0 + $0x1d0] sm:$0xff] }
  0x37   :  { %1773 = vmatprep.subr.bf16.mxu1 %v1881_v32  ;;  %v53_v32 = vld [vmem:[%s2482_s0 + $0x118] sm:$0xff]  ;;  %v80_v55 = vld [vmem:[%s2482_s0 + $0x1f0] sm:$0xff] }
  0x38   :  { %v1503_v62 = vcombine.low %v76_v54, %v80_v55 }
  0x39   :  { %1710 = vmatpush3.bf16.msra.mxu0 %v1880_v31  ;;  %v56_v31 = vld [vmem:[%s2482_s0 + $0x130] sm:$0xff] }
  0x3a   :  { %1774 = vmatpush3.bf16.msra.mxu1 %v1882_v33  ;;  %1711 = vmatprep.subr.bf16.mxu0 %v1883_v38  ;;  %v57_v33 = vld [vmem:[%s2482_s0 + $0x138] sm:$0xff]  ;;  %v60_v38 = vld [vmem:[%s2482_s0 + $0x150] sm:$0xff]  ;;  %v1479_v42 = vcombine.low %v52_v30, %v56_v31 }
  0x3b   :  { %978 = vmatmul.mubr.bf16.gmra.mrb[12].mxu0 %v1467_v19  ;;  %1775 = vmatprep.subr.bf16.mxu1 %v1885_v40  ;;  %v1457_v19 = vcombine.low %v29_v8, %v33_v9  ;;  %v61_v40 = vld [vmem:[%s2482_s0 + $0x158] sm:$0xff] }
  0x3c   :  { %1075 = vmatmul.mubr.bf16.gmra.mrb[12].mxu1 %v1469_v21  ;;  %985 = vmatprep.mubr.bf16.mxu0 %v1476_v22  ;;  %v1466_v21 = vcombine.high %v37_v16, %v41_v17  ;;  %v44_v22 = vld [vmem:[%s2482_s0 + $0xd0] sm:$0xff]  ;;  %v1490_v45 = vcombine.high %v61_v40, %v65_v41 }
  0x3d   :  { %1082 = vmatprep.mubr.bf16.mxu1 %v1478_v24  ;;  %1712 = vmatpush3.bf16.msra.mxu0 %v1884_v39  ;;  %v45_v24 = vld [vmem:[%s2482_s0 + $0xd8] sm:$0xff]  ;;  %v1472_v28 = vcombine.high %v44_v22, %v48_v23  ;;  %v64_v39 = vld [vmem:[%s2482_s0 + $0x170] sm:$0xff] }
  0x3e   :  { %1776 = vmatpush3.bf16.msra.mxu1 %v1886_v43  ;;  %1713 = vmatprep.subr.bf16.mxu0 %v1887_v46  ;;  %v1474_v29 = vcombine.high %v45_v24, %v49_v25  ;;  %v1481_v43 = vcombine.low %v53_v32, %v57_v33  ;;  %v1488_v44 = vcombine.high %v60_v38, %v64_v39  ;;  %v68_v46 = vld [vmem:[%s2482_s0 + $0x190] sm:$0xff] }
  0x3f   :  { %1777 = vmatprep.subr.bf16.mxu1 %v1889_v51  ;;  %v1489_v51 = vcombine.low %v61_v40, %v65_v41 }
  0x41   :  { %1714 = vmatpush3.bf16.msra.mxu0 %v1888_v48  ;;  %v69_v48 = vld [vmem:[%s2482_s0 + $0x198] sm:$0xff] }
  0x42   :  { %1778 = vmatpush3.bf16.msra.mxu1 %v1890_v53 }
  0x43   :  { %986 = vmatmul.mubr.bf16.gmra.mrb[16].mxu0 %v1475_v34  ;;  %v1471_v34 = vcombine.low %v44_v22, %v48_v23 }
  0x44   :  { %1083 = vmatmul.mubr.bf16.gmra.mrb[16].mxu1 %v1477_v35  ;;  %993 = vmatprep.mubr.bf16.mxu0 %v1484_v36  ;;  %v1473_v35 = vcombine.low %v45_v24, %v49_v25  ;;  %v1480_v36 = vcombine.high %v52_v30, %v56_v31 }
  0x45   :  { %1090 = vmatprep.mubr.bf16.mxu1 %v1486_v37  ;;  %v1482_v37 = vcombine.high %v53_v32, %v57_v33 }
  0x4b   :  { %994 = vmatmul.mubr.bf16.gmra.mrb[20].mxu0 %v1483_v47  ;;  %v72_v47 = vld [vmem:[%s2482_s0 + $0x1b0] sm:$0xff] }
  0x4c   :  { %1091 = vmatmul.mubr.bf16.gmra.mrb[20].mxu1 %v1485_v49  ;;  %1001 = vmatprep.mubr.bf16.mxu0 %v1492_v50  ;;  %v73_v49 = vld [vmem:[%s2482_s0 + $0x1b8] sm:$0xff]  ;;  %v1487_v50 = vcombine.low %v60_v38, %v64_v39 }
  0x4d   :  { %1098 = vmatprep.mubr.bf16.mxu1 %v1494_v52  ;;  %v1496_v52 = vcombine.high %v68_v46, %v72_v47  ;;  %v1498_v53 = vcombine.high %v69_v48, %v73_v49 }
  0x53   :  { %1002 = vmatmul.mubr.bf16.gmra.mrb[24].mxu0 %v1491_v58  ;;  %v1495_v58 = vcombine.low %v68_v46, %v72_v47 }
  0x54   :  { %1099 = vmatmul.mubr.bf16.gmra.mrb[24].mxu1 %v1493_v59  ;;  %1009 = vmatprep.mubr.bf16.mxu0 %v1500_v60  ;;  %v1497_v59 = vcombine.low %v69_v48, %v73_v49  ;;  %v1504_v60 = vcombine.high %v76_v54, %v80_v55 }
  0x55   :  { %1106 = vmatprep.mubr.bf16.mxu1 %v1502_v61  ;;  %v1506_v61 = vcombine.high %v77_v56, %v81_v57 }
  0x5b   :  { %1010 = vmatmul.mubr.bf16.gmra.mrb[28].mxu0 %v1499_v2  ;;  %v2303_v2 = vld [vmem:[%s2483_s2] ss:$0 sm:$0xff] }
  0x5c   :  { %1107 = vmatmul.mubr.bf16.gmra.mrb[28].mxu1 %v1501_v3  ;;  %1147 = vmatprep.mubr.bf16.mxu0 %v1448_v4 }
  0x5d   :  { %1244 = vmatprep.mubr.bf16.mxu1 %v1450_v5 }
  0x63   :  { %1148 = vmatmul.mubr.bf16.vlgmr.msra.gmra.mrb[32].mxu0 %v1447_v10 }
  0x64   :  { %1245 = vmatmul.mubr.bf16.vlgmr.msra.gmra.mrb[32].mxu1 %v1449_v11  ;;  %1155 = vmatprep.mubr.bf16.mxu0 %v1456_v12 }
  0x65   :  { %1252 = vmatprep.mubr.bf16.mxu1 %v1458_v13 }
  0x6b   :  { %1156 = vmatmul.mubr.bf16.gmra.mrb[36].mxu0 %v1455_v18 }
  0x6c   :  { %1253 = vmatmul.mubr.bf16.gmra.mrb[36].mxu1 %v1457_v19  ;;  %1163 = vmatprep.mubr.bf16.mxu0 %v1464_v20 }
  0x6d   :  { %1260 = vmatprep.mubr.bf16.mxu1 %v1466_v21 }
  0x73   :  { %1164 = vmatmul.mubr.bf16.gmra.mrb[40].mxu0 %v1463_v26 }
  0x74   :  { %1261 = vmatmul.mubr.bf16.gmra.mrb[40].mxu1 %v1465_v27  ;;  %1171 = vmatprep.mubr.bf16.mxu0 %v1472_v28 }
  0x75   :  { %1268 = vmatprep.mubr.bf16.mxu1 %v1474_v29 }
  0x7b   :  { %1172 = vmatmul.mubr.bf16.gmra.mrb[44].mxu0 %v1471_v34 }
  0x7c   :  { %1269 = vmatmul.mubr.bf16.gmra.mrb[44].mxu1 %v1473_v35  ;;  %1179 = vmatprep.mubr.bf16.mxu0 %v1480_v36 }
  0x7d   :  { %1276 = vmatprep.mubr.bf16.mxu1 %v1482_v37 }
  0x83   :  { %1180 = vmatmul.mubr.bf16.gmra.mrb[48].mxu0 %v1479_v42 }
  0x84   :  { %1277 = vmatmul.mubr.bf16.gmra.mrb[48].mxu1 %v1481_v43  ;;  %1187 = vmatprep.mubr.bf16.mxu0 %v1488_v44 }
  0x85   :  { %1284 = vmatprep.mubr.bf16.mxu1 %v1490_v45 }
  0x8b   :  { %1188 = vmatmul.mubr.bf16.gmra.mrb[52].mxu0 %v1487_v50 }
  0x8c   :  { %1285 = vmatmul.mubr.bf16.gmra.mrb[52].mxu1 %v1489_v51  ;;  %1195 = vmatprep.mubr.bf16.mxu0 %v1496_v52 }
  0x8d   :  { %1292 = vmatprep.mubr.bf16.mxu1 %v1498_v53 }
  0x93   :  { %1196 = vmatmul.mubr.bf16.gmra.mrb[56].mxu0 %v1495_v58 }
  0x94   :  { %1293 = vmatmul.mubr.bf16.gmra.mrb[56].mxu1 %v1497_v59  ;;  %1203 = vmatprep.mubr.bf16.mxu0 %v1504_v60 }
  0x95   :  { %1300 = vmatprep.mubr.bf16.mxu1 %v1506_v61 }
  0x9b   :  { %1204 = vmatmul.mubr.bf16.gmra.mrb[60].mxu0 %v1503_v62 }
  0x9c   :  { %1301 = vmatmul.mubr.bf16.gmra.mrb[60].mxu1 %v1505_v63 }
  0xf6   :  { %v1587_v0 = vpop.f32.mrb[0].mxu0 }
  0xf7   :  { %v1651_v1 = vpop.f32.mrb[0].mxu1  ;;  %v1588_v3 = vpop.f32.mrb[1].mxu0 }
  0xf8   :  { %v1589_v4 = vadd.f32 %v1588_v3, %v1587_v0  ;;  %v1652_v5 = vpop.f32.mrb[1].mxu1  ;;  %v1590_v6 = vpop.f32.mrb[2].mxu0 }
  0xf9   :  { %v1653_v7 = vadd.f32 %v1652_v5, %v1651_v1  ;;  %v1654_v8 = vpop.f32.mrb[2].mxu1  ;;  %v1591_v9 = vpop.f32.mrb[3].mxu0 }
  0xfa   :  { %v956_v10 = vadd.f32 %v1589_v4, %v2303_v2  ;;  %v1592_v11 = vadd.f32 %v1591_v9, %v1590_v6  ;;  %v1655_v12 = vpop.f32.mrb[3].mxu1 }
  0xfb   :  { %v1656_v13 = vadd.f32 %v1655_v12, %v1654_v8 }
  0xfc   :  { %v2306_v14 = vadd.f32 %v1653_v7, %v956_v10  ;;  %v959_v15 = vadd.f32 %v1592_v11, %v2303_v2 }
  0xfe   :  { %v2309_v16 = vadd.f32 %v1656_v13, %v959_v15  ;;  %v1593_v17 = vpop.f32.mrb[4].mxu0 }
  0xff   :  { %v1657_v18 = vpop.f32.mrb[4].mxu1  ;;  %v1594_v19 = vpop.f32.mrb[5].mxu0 }
 0x100   :  { %v1595_v20 = vadd.f32 %v1594_v19, %v1593_v17  ;;  %v1658_v21 = vpop.f32.mrb[5].mxu1  ;;  %v1596_v22 = vpop.f32.mrb[6].mxu0 }
 0x101   :  { %v1659_v23 = vadd.f32 %v1658_v21, %v1657_v18  ;;  %v1660_v24 = vpop.f32.mrb[6].mxu1  ;;  %v1597_v25 = vpop.f32.mrb[7].mxu0 }
 0x102   :  { %v964_v26 = vadd.f32 %v1595_v20, %v2303_v2  ;;  %v1598_v27 = vadd.f32 %v1597_v25, %v1596_v22  ;;  %v1661_v28 = vpop.f32.mrb[7].mxu1 }
 0x103   :  { %v1662_v29 = vadd.f32 %v1661_v28, %v1660_v24 }
 0x104   :  { %v2312_v30 = vadd.f32 %v1659_v23, %v964_v26  ;;  %v967_v31 = vadd.f32 %v1598_v27, %v2303_v2 }
 0x106   :  { %v2315_v32 = vadd.f32 %v1662_v29, %v967_v31  ;;  %v1599_v33 = vpop.f32.mrb[8].mxu0 }
 0x107   :  { %v1663_v34 = vpop.f32.mrb[8].mxu1  ;;  %v1600_v35 = vpop.f32.mrb[9].mxu0 }
 0x108   :  { %v1601_v36 = vadd.f32 %v1600_v35, %v1599_v33  ;;  %v1664_v37 = vpop.f32.mrb[9].mxu1  ;;  %v1602_v38 = vpop.f32.mrb[10].mxu0 }
 0x109   :  { %v1665_v39 = vadd.f32 %v1664_v37, %v1663_v34  ;;  %v1666_v40 = vpop.f32.mrb[10].mxu1  ;;  %v1603_v41 = vpop.f32.mrb[11].mxu0 }
 0x10a   :  { %v972_v42 = vadd.f32 %v1601_v36, %v2303_v2  ;;  %v1604_v43 = vadd.f32 %v1603_v41, %v1602_v38  ;;  %v1667_v44 = vpop.f32.mrb[11].mxu1 }
 0x10b   :  { %v1668_v45 = vadd.f32 %v1667_v44, %v1666_v40 }
 0x10c   :  { %v2318_v46 = vadd.f32 %v1665_v39, %v972_v42  ;;  %v975_v47 = vadd.f32 %v1604_v43, %v2303_v2 }
 0x10e   :  { %v2321_v48 = vadd.f32 %v1668_v45, %v975_v47  ;;  %v1605_v49 = vpop.f32.mrb[12].mxu0 }
 0x10f   :  { %v1669_v50 = vpop.f32.mrb[12].mxu1  ;;  %v1606_v51 = vpop.f32.mrb[13].mxu0 }
 0x110   :  { %v1607_v52 = vadd.f32 %v1606_v51, %v1605_v49  ;;  %v1670_v53 = vpop.f32.mrb[13].mxu1  ;;  %v1608_v54 = vpop.f32.mrb[14].mxu0 }
 0x111   :  { %v1671_v55 = vadd.f32 %v1670_v53, %v1669_v50  ;;  %v1672_v56 = vpop.f32.mrb[14].mxu1  ;;  %v1609_v57 = vpop.f32.mrb[15].mxu0 }
 0x112   :  { %v980_v58 = vadd.f32 %v1607_v52, %v2303_v2  ;;  %v1610_v59 = vadd.f32 %v1609_v57, %v1608_v54  ;;  %v1673_v60 = vpop.f32.mrb[15].mxu1 }
 0x113   :  { %v1674_v61 = vadd.f32 %v1673_v60, %v1672_v56 }
 0x114   :  { %v2324_v62 = vadd.f32 %v1671_v55, %v980_v58  ;;  %v983_v63 = vadd.f32 %v1610_v59, %v2303_v2 }
 0x116   :  { %v2327_v0 = vadd.f32 %v1674_v61, %v983_v63  ;;  %v1611_v1 = vpop.f32.mrb[16].mxu0 }
 0x117   :  { %v1675_v3 = vpop.f32.mrb[16].mxu1  ;;  %v1612_v4 = vpop.f32.mrb[17].mxu0 }
 0x118   :  { %v1613_v5 = vadd.f32 %v1612_v4, %v1611_v1  ;;  %v1676_v6 = vpop.f32.mrb[17].mxu1  ;;  %v1614_v7 = vpop.f32.mrb[18].mxu0 }
 0x119   :  { %v1677_v8 = vadd.f32 %v1676_v6, %v1675_v3  ;;  %v1678_v9 = vpop.f32.mrb[18].mxu1  ;;  %v1615_v10 = vpop.f32.mrb[19].mxu0 }
 0x11a   :  { %v988_v11 = vadd.f32 %v1613_v5, %v2303_v2  ;;  %v1616_v12 = vadd.f32 %v1615_v10, %v1614_v7  ;;  %v1679_v13 = vpop.f32.mrb[19].mxu1 }
 0x11b   :  { %v1680_v15 = vadd.f32 %v1679_v13, %v1678_v9 }
 0x11c   :  { %v2330_v17 = vadd.f32 %v1677_v8, %v988_v11  ;;  %v991_v18 = vadd.f32 %v1616_v12, %v2303_v2 }
 0x11e   :  { %v2333_v19 = vadd.f32 %v1680_v15, %v991_v18  ;;  %v1617_v20 = vpop.f32.mrb[20].mxu0 }
 0x11f   :  { %v1681_v21 = vpop.f32.mrb[20].mxu1  ;;  %v1618_v22 = vpop.f32.mrb[21].mxu0 }
 0x120   :  { %v1619_v23 = vadd.f32 %v1618_v22, %v1617_v20  ;;  %v1682_v24 = vpop.f32.mrb[21].mxu1  ;;  %v1620_v25 = vpop.f32.mrb[22].mxu0 }
 0x121   :  { %v1683_v26 = vadd.f32 %v1682_v24, %v1681_v21  ;;  %v1684_v27 = vpop.f32.mrb[22].mxu1  ;;  %v1621_v28 = vpop.f32.mrb[23].mxu0 }
 0x122   :  { %v996_v29 = vadd.f32 %v1619_v23, %v2303_v2  ;;  %v1622_v31 = vadd.f32 %v1621_v28, %v1620_v25  ;;  %v1685_v33 = vpop.f32.mrb[23].mxu1 }
 0x123   :  { %v1686_v34 = vadd.f32 %v1685_v33, %v1684_v27 }
 0x124   :  { %v2336_v35 = vadd.f32 %v1683_v26, %v996_v29  ;;  %v999_v36 = vadd.f32 %v1622_v31, %v2303_v2 }
 0x126   :  { %v2339_v37 = vadd.f32 %v1686_v34, %v999_v36  ;;  %v1623_v38 = vpop.f32.mrb[24].mxu0  ;;  %v1357_v34 = vld [vmem:[%s2484_s3] sm:$0xff] }
 0x127   :  { %v1687_v39 = vpop.f32.mrb[24].mxu1  ;;  %v1624_v40 = vpop.f32.mrb[25].mxu0 }
 0x128   :  { %v1625_v41 = vadd.f32 %v1624_v40, %v1623_v38  ;;  %v1688_v42 = vpop.f32.mrb[25].mxu1  ;;  %v1626_v43 = vpop.f32.mrb[26].mxu0 }
 0x129   :  { %v1689_v44 = vadd.f32 %v1688_v42, %v1687_v39  ;;  %v1690_v45 = vpop.f32.mrb[26].mxu1  ;;  %v1627_v47 = vpop.f32.mrb[27].mxu0 }
 0x12a   :  { %v1004_v49 = vadd.f32 %v1625_v41, %v2303_v2  ;;  %v1628_v50 = vadd.f32 %v1627_v47, %v1626_v43  ;;  %v1691_v51 = vpop.f32.mrb[27].mxu1 }
 0x12b   :  { %v1692_v52 = vadd.f32 %v1691_v51, %v1690_v45 }
 0x12c   :  { %v2342_v53 = vadd.f32 %v1689_v44, %v1004_v49  ;;  %v1007_v54 = vadd.f32 %v1628_v50, %v2303_v2 }
 0x12e   :  { %v2345_v55 = vadd.f32 %v1692_v52, %v1007_v54  ;;  %v1629_v56 = vpop.f32.mrb[28].mxu0  ;;  %v1358_v52 = vld [vmem:[%s2484_s3 + $0x8] sm:$0xff] }
 0x12f   :  { %v1693_v57 = vpop.f32.mrb[28].mxu1  ;;  %v1630_v58 = vpop.f32.mrb[29].mxu0 }
 0x130   :  { %v1631_v59 = vadd.f32 %v1630_v58, %v1629_v56  ;;  %v1694_v60 = vpop.f32.mrb[29].mxu1  ;;  %v1632_v61 = vpop.f32.mrb[30].mxu0 }
 0x131   :  { %v1695_v63 = vadd.f32 %v1694_v60, %v1693_v57  ;;  %v1696_v1 = vpop.f32.mrb[30].mxu1  ;;  %v1633_v3 = vpop.f32.mrb[31].mxu0 }
 0x132   :  { %v1012_v4 = vadd.f32 %v1631_v59, %v2303_v2  ;;  %v1634_v5 = vadd.f32 %v1633_v3, %v1632_v61  ;;  %v1697_v6 = vpop.f32.mrb[31].mxu1 }
 0x133   :  { %v1698_v7 = vadd.f32 %v1697_v6, %v1696_v1 }
 0x134   :  { %v2348_v8 = vadd.f32 %v1695_v63, %v1012_v4  ;;  %v1015_v9 = vadd.f32 %v1634_v5, %v2303_v2 }
 0x136   :  { %v2351_v10 = vadd.f32 %v1698_v7, %v1015_v9  ;;  %v1715_v11 = vpop.f32.mrb[32].mxu0 }
 0x137   :  { %v1779_v12 = vpop.f32.mrb[32].mxu1  ;;  %v1716_v13 = vpop.f32.mrb[33].mxu0 }
 0x138   :  { %v1717_v15 = vadd.f32 %v1716_v13, %v1715_v11  ;;  %v1780_v18 = vpop.f32.mrb[33].mxu1  ;;  %v1718_v20 = vpop.f32.mrb[34].mxu0 }
 0x139   :  { %v1781_v21 = vadd.f32 %v1780_v18, %v1779_v12  ;;  %v1782_v22 = vpop.f32.mrb[34].mxu1  ;;  %v1719_v23 = vpop.f32.mrb[35].mxu0 }
 0x13a   :  { %v1150_v24 = vadd.f32 %v1717_v15, %v2306_v14  ;;  %v1720_v25 = vadd.f32 %v1719_v23, %v1718_v20  ;;  %v1783_v26 = vpop.f32.mrb[35].mxu1 }
 0x13b   :  { %v1784_v27 = vadd.f32 %v1783_v26, %v1782_v22 }
 0x13c   :  { %v1247_v28 = vadd.f32 %v1781_v21, %v1150_v24  ;;  %v1153_v29 = vadd.f32 %v1720_v25, %v2309_v16  ;;  %v1360_v21 = vld [vmem:[%s2484_s3 + $0x18] sm:$0xff] }
 0x13e   :  { %v1250_v2 = vadd.f32 %v1784_v27, %v1153_v29  ;;  %v1721_v31 = vpop.f32.mrb[36].mxu0  ;;  %vm1309_vm0 = vcmp.ge.f32.partialorder %v1247_v28, 0.0  ;;  %v1325_v33 = vmul.f32 0.2, %v1247_v28 }
 0x13f   :  { %v1785_v36 = vpop.f32.mrb[36].mxu1  ;;  %v1722_v38 = vpop.f32.mrb[37].mxu0 }
 0x140   :  { %v1723_v39 = vadd.f32 %v1722_v38, %v1721_v31  ;;  %v1786_v40 = vpop.f32.mrb[37].mxu1  ;;  %v1724_v41 = vpop.f32.mrb[38].mxu0  ;;  %v1341_v14 = vsel %vm1309_vm0, %v1247_v28, %v1325_v33  ;;  %vm1310_vm1 = vcmp.ge.f32.partialorder %v1250_v2, 0.0  ;;  %v1326_v42 = vmul.f32 0.2, %v1250_v2 }
 0x141   :  { %v1787_v43 = vadd.f32 %v1786_v40, %v1785_v36  ;;  %v1788_v44 = vpop.f32.mrb[38].mxu1  ;;  %v1725_v45 = vpop.f32.mrb[39].mxu0  ;;  %v1373_v16 = vmul.f32 %v1357_v34, %v1341_v14  ;;  %vm1421_vm0 = vcmask 7168  }
 0x142   :  { %v1158_v47 = vadd.f32 %v1723_v39, %v2312_v30  ;;  %v1726_v49 = vadd.f32 %v1725_v45, %v1724_v41  ;;  %v1789_v50 = vpop.f32.mrb[39].mxu1  ;;  %v1342_v51 = vsel %vm1310_vm1, %v1250_v2, %v1326_v42  ;;  %v1359_v30 = vld [vmem:[%s2484_s3 + $0x10] sm:$0xff] }
 0x143   :  { %v1790_v54 = vadd.f32 %v1789_v50, %v1788_v44  ;;  %1389 = vadd.xlane.f32.xlu0 %v1373_v16  ;;  %v1374_v58 = vmul.f32 %v1358_v52, %v1342_v51 }
 0x144   :  { %v1255_v56 = vadd.f32 %v1787_v43, %v1158_v47  ;;  %v1161_v57 = vadd.f32 %v1726_v49, %v2315_v32 }
 0x146   :  { %v1258_v59 = vadd.f32 %v1790_v54, %v1161_v57  ;;  %v1727_v60 = vpop.f32.mrb[40].mxu0  ;;  %vm1311_vm2 = vcmp.ge.f32.partialorder %v1255_v56, 0.0  ;;  %v1327_v61 = vmul.f32 0.2, %v1255_v56 }
 0x147   :  { %v1791_v63 = vpop.f32.mrb[40].mxu1  ;;  %v1728_v1 = vpop.f32.mrb[41].mxu0  ;;  %1391 = vadd.xlane.f32.xlu0 %v1374_v58 }
 0x148   :  { %v1729_v3 = vadd.f32 %v1728_v1, %v1727_v60  ;;  %v1792_v4 = vpop.f32.mrb[41].mxu1  ;;  %v1730_v5 = vpop.f32.mrb[42].mxu0  ;;  %v1343_v6 = vsel %vm1311_vm2, %v1255_v56, %v1327_v61  ;;  %vm1312_vm3 = vcmp.ge.f32.partialorder %v1258_v59, 0.0  ;;  %v1328_v7 = vmul.f32 0.2, %v1258_v59  ;;  %v1363_v56 = vld [vmem:[%s2484_s3 + $0x30] sm:$0xff] }
 0x149   :  { %v1793_v9 = vadd.f32 %v1792_v4, %v1791_v63  ;;  %v1794_v32 = vpop.f32.mrb[42].mxu1  ;;  %v1731_v11 = vpop.f32.mrb[43].mxu0  ;;  %v1375_v12 = vmul.f32 %v1359_v30, %v1343_v6 }
 0x14a   :  { %v1166_v13 = vadd.f32 %v1729_v3, %v2318_v46  ;;  %v1732_v15 = vadd.f32 %v1731_v11, %v1730_v5  ;;  %v1795_v18 = vpop.f32.mrb[43].mxu1  ;;  %v1344_v20 = vsel %vm1312_vm3, %v1258_v59, %v1328_v7  ;;  %v1361_v46 = vld [vmem:[%s2484_s3 + $0x20] sm:$0xff] }
 0x14b   :  { %v1796_v22 = vadd.f32 %v1795_v18, %v1794_v32  ;;  %1393 = vadd.xlane.f32.xlu1 %v1375_v12  ;;  %v1376_v25 = vmul.f32 %v1360_v21, %v1344_v20  ;;  %v1365_v21 = vld [vmem:[%s2484_s3 + $0x40] sm:$0xff] }
 0x14c   :  { %v1263_v23 = vadd.f32 %v1793_v9, %v1166_v13  ;;  %v1169_v24 = vadd.f32 %v1732_v15, %v2321_v48  ;;  %v1362_v48 = vld [vmem:[%s2484_s3 + $0x28] sm:$0xff] }
 0x14e   :  { %v1266_v26 = vadd.f32 %v1796_v22, %v1169_v24  ;;  %v1733_v27 = vpop.f32.mrb[44].mxu0  ;;  %vm1313_vm4 = vcmp.ge.f32.partialorder %v1263_v23, 0.0  ;;  %v1329_v28 = vmul.f32 0.2, %v1263_v23 }
 0x14f   :  { %v1797_v29 = vpop.f32.mrb[44].mxu1  ;;  %v1734_v2 = vpop.f32.mrb[45].mxu0  ;;  %1395 = vadd.xlane.f32.xlu1 %v1376_v25 }
 0x150   :  { %v1735_v31 = vadd.f32 %v1734_v2, %v1733_v27  ;;  %v1798_v33 = vpop.f32.mrb[45].mxu1  ;;  %v1736_v34 = vpop.f32.mrb[46].mxu0  ;;  %v1345_v36 = vsel %vm1313_vm4, %v1263_v23, %v1329_v28  ;;  %vm1314_vm5 = vcmp.ge.f32.partialorder %v1266_v26, 0.0  ;;  %v1330_v38 = vmul.f32 0.2, %v1266_v26 }
 0x151   :  { %v1799_v39 = vadd.f32 %v1798_v33, %v1797_v29  ;;  %v1800_v40 = vpop.f32.mrb[46].mxu1  ;;  %v1737_v41 = vpop.f32.mrb[47].mxu0  ;;  %v1377_v14 = vmul.f32 %v1361_v46, %v1345_v36 }
 0x152   :  { %v1174_v42 = vadd.f32 %v1735_v31, %v2324_v62  ;;  %v1738_v43 = vadd.f32 %v1737_v41, %v1736_v34  ;;  %v1801_v44 = vpop.f32.mrb[47].mxu1  ;;  %v1346_v45 = vsel %vm1314_vm5, %v1266_v26, %v1330_v38 }
 0x153   :  { %v1802_v16 = vadd.f32 %v1801_v44, %v1800_v40  ;;  %1397 = vadd.xlane.f32.xlu0 %v1377_v14  ;;  %v1378_v47 = vmul.f32 %v1362_v48, %v1346_v45 }
 0x154   :  { %v1271_v49 = vadd.f32 %v1799_v39, %v1174_v42  ;;  %v1177_v50 = vadd.f32 %v1738_v43, %v2327_v0  ;;  %v1364_v0 = vld [vmem:[%s2484_s3 + $0x38] sm:$0xff]  ;;  %v1367_v43 = vld [vmem:[%s2484_s3 + $0x50] sm:$0xff] }
 0x155   :  { %1399 = vadd.xlane.f32.xlu1 %v1378_v47 }
 0x156   :  { %v1274_v51 = vadd.f32 %v1802_v16, %v1177_v50  ;;  %v1739_v52 = vpop.f32.mrb[48].mxu0  ;;  %vm1315_vm6 = vcmp.ge.f32.partialorder %v1271_v49, 0.0  ;;  %v1331_v54 = vmul.f32 0.2, %v1271_v49 }
 0x157   :  { %v1803_v57 = vpop.f32.mrb[48].mxu1  ;;  %v1740_v62 = vpop.f32.mrb[49].mxu0 }
 0x158   :  { %v1741_v58 = vadd.f32 %v1740_v62, %v1739_v52  ;;  %v1804_v59 = vpop.f32.mrb[49].mxu1  ;;  %v1742_v60 = vpop.f32.mrb[50].mxu0  ;;  %v1347_v61 = vsel %vm1315_vm6, %v1271_v49, %v1331_v54  ;;  %vm1316_vm7 = vcmp.ge.f32.partialorder %v1274_v51, 0.0  ;;  %v1332_v30 = vmul.f32 0.2, %v1274_v51 }
 0x159   :  { %v1805_v63 = vadd.f32 %v1804_v59, %v1803_v57  ;;  %v1806_v1 = vpop.f32.mrb[50].mxu1  ;;  %v1743_v3 = vpop.f32.mrb[51].mxu0  ;;  %v1379_v4 = vmul.f32 %v1363_v56, %v1347_v61 }
 0x15a   :  { %v1182_v5 = vadd.f32 %v1741_v58, %v2330_v17  ;;  %v1744_v6 = vadd.f32 %v1743_v3, %v1742_v60  ;;  %v1807_v7 = vpop.f32.mrb[51].mxu1  ;;  %v1348_v9 = vsel %vm1316_vm7, %v1274_v51, %v1332_v30 }
 0x15b   :  { %v1808_v32 = vadd.f32 %v1807_v7, %v1806_v1  ;;  %1401 = vadd.xlane.f32.xlu0 %v1379_v4  ;;  %v1380_v11 = vmul.f32 %v1364_v0, %v1348_v9  ;;  %v1369_v4 = vld [vmem:[%s2484_s3 + $0x60] sm:$0xff] }
 0x15c   :  { %v1279_v12 = vadd.f32 %v1805_v63, %v1182_v5  ;;  %v1185_v13 = vadd.f32 %v1744_v6, %v2333_v19  ;;  %v1366_v19 = vld [vmem:[%s2484_s3 + $0x48] sm:$0xff] }
 0x15d   :  { %1403 = vadd.xlane.f32.xlu1 %v1380_v11 }
 0x15e   :  { %v1282_v15 = vadd.f32 %v1808_v32, %v1185_v13  ;;  %v1745_v18 = vpop.f32.mrb[52].mxu0  ;;  %vm1317_vm8 = vcmp.ge.f32.partialorder %v1279_v12, 0.0  ;;  %v1333_v20 = vmul.f32 0.2, %v1279_v12 }
 0x15f   :  { %v1809_v22 = vpop.f32.mrb[52].mxu1  ;;  %v1746_v17 = vpop.f32.mrb[53].mxu0 }
 0x160   :  { %v1747_v23 = vadd.f32 %v1746_v17, %v1745_v18  ;;  %v1810_v24 = vpop.f32.mrb[53].mxu1  ;;  %v1748_v25 = vpop.f32.mrb[54].mxu0  ;;  %v1349_v26 = vsel %vm1317_vm8, %v1279_v12, %v1333_v20  ;;  %vm1318_vm9 = vcmp.ge.f32.partialorder %v1282_v15, 0.0  ;;  %v1334_v27 = vmul.f32 0.2, %v1282_v15 }
 0x161   :  { %v1811_v28 = vadd.f32 %v1810_v24, %v1809_v22  ;;  %v1812_v46 = vpop.f32.mrb[54].mxu1  ;;  %v1749_v29 = vpop.f32.mrb[55].mxu0  ;;  %v1381_v2 = vmul.f32 %v1365_v21, %v1349_v26 }
 0x162   :  { %v1190_v31 = vadd.f32 %v1747_v23, %v2336_v35  ;;  %v1750_v33 = vadd.f32 %v1749_v29, %v1748_v25  ;;  %v1813_v34 = vpop.f32.mrb[55].mxu1  ;;  %v1350_v36 = vsel %vm1318_vm9, %v1282_v15, %v1334_v27  ;;  %v1372_v29 = vld [vmem:[%s2484_s3 + $0x78] sm:$0xff] }
 0x163   :  { %v1814_v38 = vadd.f32 %v1813_v34, %v1812_v46  ;;  %1405 = vadd.xlane.f32.xlu0 %v1381_v2  ;;  %v1382_v48 = vmul.f32 %v1366_v19, %v1350_v36 }
 0x164   :  { %v1287_v39 = vadd.f32 %v1811_v28, %v1190_v31  ;;  %v1193_v40 = vadd.f32 %v1750_v33, %v2339_v37  ;;  %v1368_v37 = vld [vmem:[%s2484_s3 + $0x58] sm:$0xff]  ;;  %v1371_v28 = vld [vmem:[%s2484_s3 + $0x70] sm:$0xff] }
 0x165   :  { %1407 = vadd.xlane.f32.xlu1 %v1382_v48 }
 0x166   :  { %v1290_v41 = vadd.f32 %v1814_v38, %v1193_v40  ;;  %v1751_v14 = vpop.f32.mrb[56].mxu0  ;;  %vm1319_vm10 = vcmp.ge.f32.partialorder %v1287_v39, 0.0  ;;  %v1335_v42 = vmul.f32 0.2, %v1287_v39 }
 0x167   :  { %v1815_v44 = vpop.f32.mrb[56].mxu1  ;;  %v1752_v35 = vpop.f32.mrb[57].mxu0 }
 0x168   :  { %v1753_v45 = vadd.f32 %v1752_v35, %v1751_v14  ;;  %v1816_v16 = vpop.f32.mrb[57].mxu1  ;;  %v1754_v47 = vpop.f32.mrb[58].mxu0  ;;  %v1351_v49 = vsel %vm1319_vm10, %v1287_v39, %v1335_v42  ;;  %vm1320_vm11 = vcmp.ge.f32.partialorder %v1290_v41, 0.0  ;;  %v1336_v50 = vmul.f32 0.2, %v1290_v41 }
 0x169   :  { %v1817_v51 = vadd.f32 %v1816_v16, %v1815_v44  ;;  %v1818_v52 = vpop.f32.mrb[58].mxu1  ;;  %v1755_v54 = vpop.f32.mrb[59].mxu0  ;;  %v1383_v56 = vmul.f32 %v1367_v43, %v1351_v49 }
 0x16a   :  { %v1198_v57 = vadd.f32 %v1753_v45, %v2342_v53  ;;  %v1756_v62 = vadd.f32 %v1755_v54, %v1754_v47  ;;  %v1819_v58 = vpop.f32.mrb[59].mxu1  ;;  %v1352_v59 = vsel %vm1320_vm11, %v1290_v41, %v1336_v50 }
 0x16b   :  { %v1820_v60 = vadd.f32 %v1819_v58, %v1818_v52  ;;  %1409 = vadd.xlane.f32.xlu0 %v1383_v56  ;;  %v1384_v61 = vmul.f32 %v1368_v37, %v1352_v59 }
 0x16c   :  { %v1295_v30 = vadd.f32 %v1817_v51, %v1198_v57  ;;  %v1201_v0 = vadd.f32 %v1756_v62, %v2345_v55  ;;  %v1370_v55 = vld [vmem:[%s2484_s3 + $0x68] sm:$0xff] }
 0x16d   :  { %1411 = vadd.xlane.f32.xlu1 %v1384_v61 }
 0x16e   :  { %v1298_v63 = vadd.f32 %v1820_v60, %v1201_v0  ;;  %v1757_v1 = vpop.f32.mrb[60].mxu0  ;;  %vm1321_vm12 = vcmp.ge.f32.partialorder %v1295_v30, 0.0  ;;  %v1337_v3 = vmul.f32 0.2, %v1295_v30 }
 0x16f   :  { %v1821_v5 = vpop.f32.mrb[60].mxu1  ;;  %v1758_v53 = vpop.f32.mrb[61].mxu0 }
 0x170   :  { %v1759_v6 = vadd.f32 %v1758_v53, %v1757_v1  ;;  %v1822_v7 = vpop.f32.mrb[61].mxu1  ;;  %v1760_v9 = vpop.f32.mrb[62].mxu0  ;;  %v1353_v32 = vsel %vm1321_vm12, %v1295_v30, %v1337_v3  ;;  %vm1322_vm13 = vcmp.ge.f32.partialorder %v1298_v63, 0.0  ;;  %v1338_v11 = vmul.f32 0.2, %v1298_v63 }
 0x171   :  { %v1823_v12 = vadd.f32 %v1822_v7, %v1821_v5  ;;  %v1824_v13 = vpop.f32.mrb[62].mxu1  ;;  %v1761_v15 = vpop.f32.mrb[63].mxu0  ;;  %v1385_v18 = vmul.f32 %v1369_v4, %v1353_v32 }
 0x172   :  { %v1206_v20 = vadd.f32 %v1759_v6, %v2348_v8  ;;  %v1762_v21 = vadd.f32 %v1761_v15, %v1760_v9  ;;  %v1825_v22 = vpop.f32.mrb[63].mxu1  ;;  %v1354_v17 = vsel %vm1322_vm13, %v1298_v63, %v1338_v11 }
 0x173   :  { %v1826_v23 = vadd.f32 %v1825_v22, %v1824_v13  ;;  %1413 = vadd.xlane.f32.xlu0 %v1385_v18  ;;  %v1386_v24 = vmul.f32 %v1370_v55, %v1354_v17 }
 0x174   :  { %v1303_v25 = vadd.f32 %v1823_v12, %v1206_v20  ;;  %v1209_v26 = vadd.f32 %v1762_v21, %v2351_v10 }
 0x175   :  { %1415 = vadd.xlane.f32.xlu1 %v1386_v24 }
 0x176   :  { %v1306_v27 = vadd.f32 %v1826_v23, %v1209_v26  ;;  %vm1323_vm14 = vcmp.ge.f32.partialorder %v1303_v25, 0.0  ;;  %v1339_v19 = vmul.f32 0.2, %v1303_v25 }
 0x178   :  { %v1355_v46 = vsel %vm1323_vm14, %v1303_v25, %v1339_v19  ;;  %vm1324_vm15 = vcmp.ge.f32.partialorder %v1306_v27, 0.0  ;;  %v1340_v8 = vmul.f32 0.2, %v1306_v27 }
 0x179   :  { %v1387_v2 = vmul.f32 %v1371_v28, %v1355_v46 }
 0x17a   :  { %v1356_v31 = vsel %vm1324_vm15, %v1306_v27, %v1340_v8 }
 0x17b   :  { %1417 = vadd.xlane.f32.xlu0 %v1387_v2  ;;  %v1388_v33 = vmul.f32 %v1372_v29, %v1356_v31 }
 0x17d   :  { %1419 = vadd.xlane.f32.xlu1 %v1388_v33 }
 0x1d0   :  { %v1390_v10 = vpop.xlane.xlu0 %1389 }
 0x1d1   :  { %1422 = vst.msk [vmem:[%s2485_s4] sm:$0xff] %vm1421_vm0, %v1390_v10 }
 0x1d4   :  { %v1392_v34 = vpop.xlane.xlu0 %1391 }
 0x1d5   :  { %1423 = vst.msk [vmem:[%s2485_s4 + $0x8] sm:$0xff] %vm1421_vm0, %v1392_v34 }
 0x1d8   :  { %v1394_v36 = vpop.xlane.xlu1 %1393 }
 0x1d9   :  { %1424 = vst.msk [vmem:[%s2485_s4 + $0x10] sm:$0xff] %vm1421_vm0, %v1394_v36 }
 0x1dc   :  { %v1396_v38 = vpop.xlane.xlu1 %1395 }
 0x1dd   :  { %1425 = vst.msk [vmem:[%s2485_s4 + $0x18] sm:$0xff] %vm1421_vm0, %v1396_v38 }
 0x1e0   :  { %v1398_v48 = vpop.xlane.xlu0 %1397 }
 0x1e1   :  { %1426 = vst.msk [vmem:[%s2485_s4 + $0x20] sm:$0xff] %vm1421_vm0, %v1398_v48 }
 0x1e2   :  { %v1400_v39 = vpop.xlane.xlu1 %1399 }
 0x1e3   :  { %1427 = vst.msk [vmem:[%s2485_s4 + $0x28] sm:$0xff] %vm1421_vm0, %v1400_v39 }
 0x1e8   :  { %v1402_v40 = vpop.xlane.xlu0 %1401 }
 0x1e9   :  { %1428 = vst.msk [vmem:[%s2485_s4 + $0x30] sm:$0xff] %vm1421_vm0, %v1402_v40 }
 0x1ea   :  { %v1404_v41 = vpop.xlane.xlu1 %1403 }
 0x1eb   :  { %1429 = vst.msk [vmem:[%s2485_s4 + $0x38] sm:$0xff] %vm1421_vm0, %v1404_v41 }
 0x1f0   :  { %v1406_v14 = vpop.xlane.xlu0 %1405 }
 0x1f1   :  { %1430 = vst.msk [vmem:[%s2485_s4 + $0x40] sm:$0xff] %vm1421_vm0, %v1406_v14 }
 0x1f2   :  { %v1408_v42 = vpop.xlane.xlu1 %1407 }
 0x1f3   :  { %1431 = vst.msk [vmem:[%s2485_s4 + $0x48] sm:$0xff] %vm1421_vm0, %v1408_v42 }
 0x1f8   :  { %v1410_v43 = vpop.xlane.xlu0 %1409 }
 0x1f9   :  { %1432 = vst.msk [vmem:[%s2485_s4 + $0x50] sm:$0xff] %vm1421_vm0, %v1410_v43 }
 0x1fa   :  { %v1412_v44 = vpop.xlane.xlu1 %1411 }
 0x1fb   :  { %1433 = vst.msk [vmem:[%s2485_s4 + $0x58] sm:$0xff] %vm1421_vm0, %v1412_v44 }
 0x200   :  { %v1414_v35 = vpop.xlane.xlu0 %1413 }
 0x201   :  { %1434 = vst.msk [vmem:[%s2485_s4 + $0x60] sm:$0xff] %vm1421_vm0, %v1414_v35 }
 0x202   :  { %v1416_v45 = vpop.xlane.xlu1 %1415 }
 0x203   :  { %1435 = vst.msk [vmem:[%s2485_s4 + $0x68] sm:$0xff] %vm1421_vm0, %v1416_v45 }
 0x208   :  { %v1418_v16 = vpop.xlane.xlu0 %1417 }
 0x209   :  { %1436 = vst.msk [vmem:[%s2485_s4 + $0x70] sm:$0xff] %vm1421_vm0, %v1418_v16 }
 0x20a   :  { %v1420_v47 = vpop.xlane.xlu1 %1419 }
 0x20b   :  { %1437 = vst.msk [vmem:[%s2485_s4 + $0x78] sm:$0xff] %vm1421_vm0, %v1420_v47 }

</bundles_post_ra>
